<compile_context>
chip_gen: v6e
topology: v6e:2x2x1
jax: 0.10.0
libtpu: 0.0.40
codegen_flags: <defaults>
</compile_context>

<pallas_src>
import functools

import jax
import jax.numpy as jnp
import numpy as np
from jax.experimental import pallas as pl
from jax.experimental.pallas import tpu as pltpu

BN_EPS = 1e-5


# ----------------------------------------------------------------------------- kernel
def disconet_kernel(x_ref, z_ref, w1w_ref, wstack_ref, midw_ref, w2w_ref,
                    vecs_ref, w2b_ref, out_ref):
    Sg, B, half = z_ref.shape          # samples handled by this grid step
    H = wstack_ref.shape[-1]
    f32 = jnp.float32

    def dot(a, w):
        # bf16 MXU path (2x rate on v6e/v7x), f32 accumulation.
        return jnp.dot(a.astype(jnp.bfloat16), w, preferred_element_type=f32)

    def bn_relu(y, gamma, beta, axis=0):
        # training-mode BatchNorm1d (biased batch stats), two-pass variance,
        # affine fused into a single scale applied to the centered values.
        mean = jnp.mean(y, axis=axis, keepdims=True)
        c = y - mean
        var = jnp.mean(c * c, axis=axis, keepdims=True)
        scale = gamma * jax.lax.rsqrt(var + BN_EPS)        # stats-row sized
        return jnp.maximum(c * scale + beta, 0.0)
        # TODO(synk): nn.Dropout after each ReLU is eval-mode identity here.

    def g(i):                                              # packed gamma/beta rows
        return vecs_ref[pl.ds(i, 1), :]                    # (1, H)

    # ---- shared front-end (M=B rows; pre-BN Linear biases cancel exactly) ----
    y = bn_relu(dot(x_ref[...], w1w_ref[...]), g(0), g(1))      # w1 -> bn1 -> relu
    h = bn_relu(dot(y, wstack_ref[0]), g(2), g(3))              # stage-1 res block
    h = bn_relu(dot(h, wstack_ref[1]), g(4), g(5))
    y = y + h
    yout = dot(y, midw_ref[...])                                # (B, half); mid bias folded into w2b

    # ---- stage-2: all Sg*B rows in one pass; concat([yout, z]) is never
    # materialized -- its matmuls are split at the lane-128 boundary ----
    z = z_ref[...].reshape(Sg * B, half)
    s2w1 = wstack_ref[2]
    s2w2 = wstack_ref[3]
    w2w = w2w_ref[...]

    c0 = dot(yout, s2w1[:half, :])                              # (B, H), shared across samples
    pre1 = dot(z, s2w1[half:, :]).reshape(Sg, B, H) + c0[None]
    h1 = bn_relu(pre1, g(6), g(7), axis=1)                      # per-sample batch stats
    pre2 = dot(h1.reshape(Sg * B, H), s2w2).reshape(Sg, B, H)
    h2 = bn_relu(pre2, g(8), g(9), axis=1)

    # out = (concat([yout, z]) + h2) @ w2 + w2b, expanded by linearity
    d0 = dot(yout, w2w[:half, :])                               # (B, out_pad)
    out = (dot(h2.reshape(Sg * B, H), w2w).reshape(Sg, B, -1)
           + dot(z, w2w[half:, :]).reshape(Sg, B, -1)
           + d0[None]
           + w2b_ref[...])
    out_ref[...] = out                                          # lane-dense (Sg, B, 128)


# ----------------------------------------------------------------------------- param packing (one time)
def pack_params(params):
    """One-time repack of the f32 torch-style params into the kernel layout:
    bf16 weight streaming, pre-BN biases dropped (exact cancellation under
    training-mode BN), mid_process bias folded into the head bias, BN
    gamma/beta rows packed into a single (10, H) array."""
    half = params["mid_w"].shape[1]
    out_dim = params["w2_w"].shape[1]
    out_pad = ((out_dim + 127) // 128) * 128
    bf16 = jnp.bfloat16

    w2w_f32 = jnp.pad(params["w2_w"], ((0, 0), (0, out_pad - out_dim)))
    w2b = jnp.pad(params["w2_b"], ((0, 0), (0, out_pad - out_dim)))
    # mid_process bias cancels inside stage-2 BN; its residual-path
    # contribution through w2 is a constant row -> fold into the head bias.
    w2b = w2b + params["mid_b"] @ w2w_f32[:half, :]

    return dict(
        w1w=params["w1_w"].astype(bf16),
        wstack=jnp.stack([params["s1_w1"], params["s1_w2"],
                          params["s2_w1"], params["s2_w2"]]).astype(bf16),
        midw=params["mid_w"].astype(bf16),
        w2w=w2w_f32.astype(bf16),
        vecs=jnp.concatenate([
            params["bn1_g"], params["bn1_b"],
            params["s1_g1"], params["s1_be1"], params["s1_g2"], params["s1_be2"],
            params["s2_g1"], params["s2_be1"], params["s2_g2"], params["s2_be2"]],
            axis=0),
        w2b=w2b,
    )


# ----------------------------------------------------------------------------- wrapper
@functools.partial(jax.jit, static_argnames=("out_dim", "num_grid"))
def disconet_forward(x, z, packed, out_dim, num_grid=2):
    """x: (B, 32) f32, z: (S, B, H//2) f32, packed: pack_params(...).
    Returns (S, B, out_dim) f32."""
    B, in_dim = x.shape
    S, _, half = z.shape
    H = packed["wstack"].shape[-1]
    out_pad = packed["w2w"].shape[-1]

    G = num_grid if S % num_grid == 0 else 1   # sample-axis grid (2 TCs on v7x)
    Sg = S // G

    grid_spec = pltpu.PrefetchScalarGridSpec(
        num_scalar_prefetch=0,
        grid=(G,),
        in_specs=[
            pl.BlockSpec((B, in_dim), lambda i: (0, 0)),        # x (recomputed front-end)
            pl.BlockSpec((Sg, B, half), lambda i: (i, 0, 0)),   # z, split over samples
            pl.BlockSpec((in_dim, H), lambda i: (0, 0)),        # w1 (bf16)
            pl.BlockSpec((4, H, H), lambda i: (0, 0, 0)),       # s1/s2 weight stack (bf16)
            pl.BlockSpec((H, half), lambda i: (0, 0)),          # mid_process (bf16)
            pl.BlockSpec((H, out_pad), lambda i: (0, 0)),       # w2, lane padded (bf16)
            pl.BlockSpec((10, H), lambda i: (0, 0)),            # packed BN gamma/beta (f32)
            pl.BlockSpec((1, out_pad), lambda i: (0, 0)),       # folded head bias (f32)
        ],
        out_specs=pl.BlockSpec((Sg, B, out_pad), lambda i: (i, 0, 0)),
    )

    out = pl.pallas_call(
        disconet_kernel,
        out_shape=jax.ShapeDtypeStruct((S, B, out_pad), jnp.float32),
        grid_spec=grid_spec,
        compiler_params=pltpu.CompilerParams(
            dimension_semantics=("parallel",)),
    )(x, z, packed["w1w"], packed["wstack"], packed["midw"], packed["w2w"],
      packed["vecs"], packed["w2b"])

    return out[..., :out_dim]


# ----------------------------------------------------------------------------- params
def _linear_init(key, fan_in, fan_out):
    # mimic torch.nn.Linear default init: U(-1/sqrt(fan_in), 1/sqrt(fan_in))
    kw, kb = jax.random.split(key)
    bound = 1.0 / np.sqrt(fan_in)
    w = jax.random.uniform(kw, (fan_in, fan_out), jnp.float32, -bound, bound)
    b = jax.random.uniform(kb, (1, fan_out), jnp.float32, -bound, bound)
    return w, b


def init_params(key, input_size, linear_size, output_size):
    H = linear_size
    keys = jax.random.split(key, 8)
    p = {}
    p["w1_w"], p["w1_b"] = _linear_init(keys[0], input_size, H)
    p["bn1_g"] = jnp.ones((1, H), jnp.float32)
    p["bn1_b"] = jnp.zeros((1, H), jnp.float32)
    # residual Linear block #1 (stage 1)
    p["s1_w1"], p["s1_b1"] = _linear_init(keys[1], H, H)
    p["s1_g1"], p["s1_be1"] = jnp.ones((1, H), jnp.float32), jnp.zeros((1, H), jnp.float32)
    p["s1_w2"], p["s1_b2"] = _linear_init(keys[2], H, H)
    p["s1_g2"], p["s1_be2"] = jnp.ones((1, H), jnp.float32), jnp.zeros((1, H), jnp.float32)
    # mid_process
    p["mid_w"], p["mid_b"] = _linear_init(keys[3], H, H // 2)
    # residual Linear block #2 (stage 2)
    p["s2_w1"], p["s2_b1"] = _linear_init(keys[4], H, H)
    p["s2_g1"], p["s2_be1"] = jnp.ones((1, H), jnp.float32), jnp.zeros((1, H), jnp.float32)
    p["s2_w2"], p["s2_b2"] = _linear_init(keys[5], H, H)
    p["s2_g2"], p["s2_be2"] = jnp.ones((1, H), jnp.float32), jnp.zeros((1, H), jnp.float32)
    # output head
    p["w2_w"], p["w2_b"] = _linear_init(keys[6], H, output_size)
    return p


# ----------------------------------------------------------------------------- pure-JAX reference
def reference_forward(x, z, p, dot_dtype=jnp.float32):
    """Torch-equivalent forward (biases included, explicit concat).  With
    dot_dtype=bf16 it applies the same matmul-input quantization as the kernel."""
    def mm(a, w):
        return jnp.dot(a.astype(dot_dtype), w.astype(dot_dtype),
                       preferred_element_type=jnp.float32)

    def bn_relu(y, g, b):
        mean = y.mean(0, keepdims=True)
        var = ((y - mean) ** 2).mean(0, keepdims=True)
        return jnp.maximum((y - mean) / jnp.sqrt(var + BN_EPS) * g + b, 0.0)

    def block(y, wa, ba, ga, bea, wb, bb, gb, beb):
        h = bn_relu(mm(y, wa) + ba, ga, bea)
        h = bn_relu(mm(h, wb) + bb, gb, beb)
        return y + h

    y = bn_relu(mm(x, p["w1_w"]) + p["w1_b"], p["bn1_g"], p["bn1_b"])
    y = block(y, p["s1_w1"], p["s1_b1"], p["s1_g1"], p["s1_be1"],
              p["s1_w2"], p["s1_b2"], p["s1_g2"], p["s1_be2"])
    y_out = mm(y, p["mid_w"]) + p["mid_b"]
    outs = []
    for i in range(z.shape[0]):
        mid = jnp.concatenate([y_out, z[i]], axis=1)
        mid = block(mid, p["s2_w1"], p["s2_b1"], p["s2_g1"], p["s2_be1"],
                    p["s2_w2"], p["s2_b2"], p["s2_g2"], p["s2_be2"])
        outs.append(mm(mid, p["w2_w"]) + p["w2_b"])
    return jnp.stack(outs)


# ----------------------------------------------------------------------------- main
if __name__ == "__main__":
    # Small but architecture-consistent shapes: input 16*2=32, output 16*3=48.
    B = 8
    INPUT_SIZE = 16 * 2
    OUTPUT_SIZE = 16 * 3
    LINEAR_SIZE = 256         # constructor arg (module default is 1024)
    NUM_SAMPLES = 10          # forward() always draws 10 pose samples

    root = jax.random.PRNGKey(0)
    k_params, k_x, k_z = jax.random.split(root, 3)

    params = init_params(k_params, INPUT_SIZE, LINEAR_SIZE, OUTPUT_SIZE)
    x = jax.random.normal(k_x, (B, INPUT_SIZE), jnp.float32)
    # the torch code draws z ~ U(0, 1) of shape y_out.size() each iteration
    z = jax.random.uniform(k_z, (NUM_SAMPLES, B, LINEAR_SIZE // 2), jnp.float32)

    packed = pack_params(params)     # one-time: bf16 weights, bias folds, packing

    out = disconet_forward(x, z, packed, out_dim=OUTPUT_SIZE)
    out = jax.block_until_ready(out)
    assert out.shape == (NUM_SAMPLES, B, OUTPUT_SIZE), out.shape

    # Structural check: reference with the same bf16 matmul-input quantization.
    ref_bf16 = reference_forward(x, z, params, dot_dtype=jnp.bfloat16)
    np.testing.assert_allclose(np.asarray(out), np.asarray(ref_bf16),
                               rtol=3e-2, atol=3e-2)
    # Semantic check vs the full-f32 torch-equivalent path (bf16 weight
    # streaming adds benign quantization noise, hence the looser tolerance).
    ref_f32 = reference_forward(x, z, params)
    np.testing.assert_allclose(np.asarray(out), np.asarray(ref_f32),
                               rtol=1e-1, atol=1e-1)

    # equivalent of the module's list-of-10 return value
    pose_3d_samples = [out[i] for i in range(NUM_SAMPLES)]
    assert len(pose_3d_samples) == 10 and pose_3d_samples[0].shape == (B, OUTPUT_SIZE)

    print("KERNEL_OK")
</pallas_src>

<mosaic_0001>
module attributes {stable_mosaic.version = 11 : i64} {
  func.func @disconet_kernel(%arg0: i32, %arg1: memref<8x32xf32, #tpu.memory_space<vmem>>, %arg2: memref<5x8x128xf32, #tpu.memory_space<vmem>>, %arg3: memref<32x256xbf16, #tpu.memory_space<vmem>>, %arg4: memref<4x256x256xbf16, #tpu.memory_space<vmem>>, %arg5: memref<256x128xbf16, #tpu.memory_space<vmem>>, %arg6: memref<256x128xbf16, #tpu.memory_space<vmem>>, %arg7: memref<10x256xf32, #tpu.memory_space<vmem>>, %arg8: memref<1x128xf32, #tpu.memory_space<vmem>>, %arg9: memref<5x8x128xf32, #tpu.memory_space<vmem>>) attributes {dimension_semantics = [#tpu.dimension_semantics<parallel>], iteration_bounds = array<i64: 2>, scalar_prefetch = 0 : i64, scratch_operands = 0 : i64, tpu.core_type = #tpu.core_type<tc>, window_params = [{pipeline_mode = #tpu.pipeline_mode<synchronous>, transform_indices = @transform_0, window_bounds = array<i64: 8, 32>}, {transform_indices = @transform_1, window_bounds = array<i64: 5, 8, 128>}, {pipeline_mode = #tpu.pipeline_mode<synchronous>, transform_indices = @transform_2, window_bounds = array<i64: 32, 256>}, {pipeline_mode = #tpu.pipeline_mode<synchronous>, transform_indices = @transform_3, window_bounds = array<i64: 4, 256, 256>}, {pipeline_mode = #tpu.pipeline_mode<synchronous>, transform_indices = @transform_4, window_bounds = array<i64: 256, 128>}, {pipeline_mode = #tpu.pipeline_mode<synchronous>, transform_indices = @transform_5, window_bounds = array<i64: 256, 128>}, {pipeline_mode = #tpu.pipeline_mode<synchronous>, transform_indices = @transform_6, window_bounds = array<i64: 10, 256>}, {pipeline_mode = #tpu.pipeline_mode<synchronous>, transform_indices = @transform_7, window_bounds = array<i64: 1, 128>}, {transform_indices = @transform_8, window_bounds = array<i64: 5, 8, 128>}]} {
    %c0 = arith.constant 0 : index
    %c0_0 = arith.constant 0 : index
    %0 = vector.load %arg1[%c0, %c0_0] : memref<8x32xf32, #tpu.memory_space<vmem>>, vector<8x32xf32>
    %c0_1 = arith.constant 0 : index
    %c0_2 = arith.constant 0 : index
    %1 = vector.load %arg3[%c0_1, %c0_2] : memref<32x256xbf16, #tpu.memory_space<vmem>>, vector<32x256xbf16>
    %2 = arith.truncf %0 : vector<8x32xf32> to vector<8x32xbf16>
    %cst = arith.constant dense<0.000000e+00> : vector<8x256xf32>
    %3 = tpu.matmul %2, %1, %cst {dimension_numbers = #tpu.dot_dimension_numbers<[1], [0], [0], [1], [0, 0, 1, 1], [], []>} : vector<8x32xbf16>, vector<32x256xbf16>, vector<8x256xf32> -> vector<8x256xf32>
    %c0_3 = arith.constant 0 : index
    %c0_4 = arith.constant 0 : index
    %4 = vector.load %arg7[%c0_3, %c0_4] : memref<10x256xf32, #tpu.memory_space<vmem>>, vector<1x256xf32>
    %c1 = arith.constant 1 : index
    %c0_5 = arith.constant 0 : index
    %5 = vector.load %arg7[%c1, %c0_5] : memref<10x256xf32, #tpu.memory_space<vmem>>, vector<1x256xf32>
    %cst_6 = arith.constant dense<0.000000e+00> : vector<256xf32>
    %6 = vector.multi_reduction <add>, %3, %cst_6 [0] : vector<8x256xf32> to vector<256xf32>
    %7 = vector.shape_cast %6 : vector<256xf32> to vector<1x256xf32>
    %cst_7 = arith.constant 8.000000e+00 : f32
    %8 = vector.broadcast %cst_7 : f32 to vector<1x256xf32>
    %9 = arith.divf %7, %8 : vector<1x256xf32>
    %10 = vector.broadcast %9 : vector<1x256xf32> to vector<8x256xf32>
    %11 = arith.subf %3, %10 : vector<8x256xf32>
    %12 = arith.mulf %11, %11 : vector<8x256xf32>
    %cst_8 = arith.constant dense<0.000000e+00> : vector<256xf32>
    %13 = vector.multi_reduction <add>, %12, %cst_8 [0] : vector<8x256xf32> to vector<256xf32>
    %14 = vector.shape_cast %13 : vector<256xf32> to vector<1x256xf32>
    %cst_9 = arith.constant 8.000000e+00 : f32
    %15 = vector.broadcast %cst_9 : f32 to vector<1x256xf32>
    %16 = arith.divf %14, %15 : vector<1x256xf32>
    %cst_10 = arith.constant 9.99999974E-6 : f32
    %17 = vector.broadcast %cst_10 : f32 to vector<1x256xf32>
    %18 = arith.addf %16, %17 : vector<1x256xf32>
    %19 = math.rsqrt %18 : vector<1x256xf32>
    %20 = arith.mulf %4, %19 : vector<1x256xf32>
    %21 = vector.broadcast %20 : vector<1x256xf32> to vector<8x256xf32>
    %22 = arith.mulf %11, %21 : vector<8x256xf32>
    %23 = vector.broadcast %5 : vector<1x256xf32> to vector<8x256xf32>
    %24 = arith.addf %22, %23 : vector<8x256xf32>
    %cst_11 = arith.constant 0.000000e+00 : f32
    %25 = vector.broadcast %cst_11 : f32 to vector<8x256xf32>
    %26 = arith.maximumf %24, %25 : vector<8x256xf32>
    %c0_12 = arith.constant 0 : index
    %c0_13 = arith.constant 0 : index
    %c0_14 = arith.constant 0 : index
    %27 = vector.load %arg4[%c0_12, %c0_13, %c0_14] : memref<4x256x256xbf16, #tpu.memory_space<vmem>>, vector<1x256x256xbf16>
    %28 = vector.shape_cast %27 : vector<1x256x256xbf16> to vector<256x256xbf16>
    %29 = arith.truncf %26 : vector<8x256xf32> to vector<8x256xbf16>
    %cst_15 = arith.constant dense<0.000000e+00> : vector<8x256xf32>
    %30 = tpu.matmul %29, %28, %cst_15 {dimension_numbers = #tpu.dot_dimension_numbers<[1], [0], [0], [1], [0, 0, 1, 1], [], []>} : vector<8x256xbf16>, vector<256x256xbf16>, vector<8x256xf32> -> vector<8x256xf32>
    %c2 = arith.constant 2 : index
    %c0_16 = arith.constant 0 : index
    %31 = vector.load %arg7[%c2, %c0_16] : memref<10x256xf32, #tpu.memory_space<vmem>>, vector<1x256xf32>
    %c3 = arith.constant 3 : index
    %c0_17 = arith.constant 0 : index
    %32 = vector.load %arg7[%c3, %c0_17] : memref<10x256xf32, #tpu.memory_space<vmem>>, vector<1x256xf32>
    %cst_18 = arith.constant dense<0.000000e+00> : vector<256xf32>
    %33 = vector.multi_reduction <add>, %30, %cst_18 [0] : vector<8x256xf32> to vector<256xf32>
    %34 = vector.shape_cast %33 : vector<256xf32> to vector<1x256xf32>
    %cst_19 = arith.constant 8.000000e+00 : f32
    %35 = vector.broadcast %cst_19 : f32 to vector<1x256xf32>
    %36 = arith.divf %34, %35 : vector<1x256xf32>
    %37 = vector.broadcast %36 : vector<1x256xf32> to vector<8x256xf32>
    %38 = arith.subf %30, %37 : vector<8x256xf32>
    %39 = arith.mulf %38, %38 : vector<8x256xf32>
    %cst_20 = arith.constant dense<0.000000e+00> : vector<256xf32>
    %40 = vector.multi_reduction <add>, %39, %cst_20 [0] : vector<8x256xf32> to vector<256xf32>
    %41 = vector.shape_cast %40 : vector<256xf32> to vector<1x256xf32>
    %cst_21 = arith.constant 8.000000e+00 : f32
    %42 = vector.broadcast %cst_21 : f32 to vector<1x256xf32>
    %43 = arith.divf %41, %42 : vector<1x256xf32>
    %cst_22 = arith.constant 9.99999974E-6 : f32
    %44 = vector.broadcast %cst_22 : f32 to vector<1x256xf32>
    %45 = arith.addf %43, %44 : vector<1x256xf32>
    %46 = math.rsqrt %45 : vector<1x256xf32>
    %47 = arith.mulf %31, %46 : vector<1x256xf32>
    %48 = vector.broadcast %47 : vector<1x256xf32> to vector<8x256xf32>
    %49 = arith.mulf %38, %48 : vector<8x256xf32>
    %50 = vector.broadcast %32 : vector<1x256xf32> to vector<8x256xf32>
    %51 = arith.addf %49, %50 : vector<8x256xf32>
    %cst_23 = arith.constant 0.000000e+00 : f32
    %52 = vector.broadcast %cst_23 : f32 to vector<8x256xf32>
    %53 = arith.maximumf %51, %52 : vector<8x256xf32>
    %c1_24 = arith.constant 1 : index
    %c0_25 = arith.constant 0 : index
    %c0_26 = arith.constant 0 : index
    %54 = vector.load %arg4[%c1_24, %c0_25, %c0_26] : memref<4x256x256xbf16, #tpu.memory_space<vmem>>, vector<1x256x256xbf16>
    %55 = vector.shape_cast %54 : vector<1x256x256xbf16> to vector<256x256xbf16>
    %56 = arith.truncf %53 : vector<8x256xf32> to vector<8x256xbf16>
    %cst_27 = arith.constant dense<0.000000e+00> : vector<8x256xf32>
    %57 = tpu.matmul %56, %55, %cst_27 {dimension_numbers = #tpu.dot_dimension_numbers<[1], [0], [0], [1], [0, 0, 1, 1], [], []>} : vector<8x256xbf16>, vector<256x256xbf16>, vector<8x256xf32> -> vector<8x256xf32>
    %c4 = arith.constant 4 : index
    %c0_28 = arith.constant 0 : index
    %58 = vector.load %arg7[%c4, %c0_28] : memref<10x256xf32, #tpu.memory_space<vmem>>, vector<1x256xf32>
    %c5 = arith.constant 5 : index
    %c0_29 = arith.constant 0 : index
    %59 = vector.load %arg7[%c5, %c0_29] : memref<10x256xf32, #tpu.memory_space<vmem>>, vector<1x256xf32>
    %cst_30 = arith.constant dense<0.000000e+00> : vector<256xf32>
    %60 = vector.multi_reduction <add>, %57, %cst_30 [0] : vector<8x256xf32> to vector<256xf32>
    %61 = vector.shape_cast %60 : vector<256xf32> to vector<1x256xf32>
    %cst_31 = arith.constant 8.000000e+00 : f32
    %62 = vector.broadcast %cst_31 : f32 to vector<1x256xf32>
    %63 = arith.divf %61, %62 : vector<1x256xf32>
    %64 = vector.broadcast %63 : vector<1x256xf32> to vector<8x256xf32>
    %65 = arith.subf %57, %64 : vector<8x256xf32>
    %66 = arith.mulf %65, %65 : vector<8x256xf32>
    %cst_32 = arith.constant dense<0.000000e+00> : vector<256xf32>
    %67 = vector.multi_reduction <add>, %66, %cst_32 [0] : vector<8x256xf32> to vector<256xf32>
    %68 = vector.shape_cast %67 : vector<256xf32> to vector<1x256xf32>
    %cst_33 = arith.constant 8.000000e+00 : f32
    %69 = vector.broadcast %cst_33 : f32 to vector<1x256xf32>
    %70 = arith.divf %68, %69 : vector<1x256xf32>
    %cst_34 = arith.constant 9.99999974E-6 : f32
    %71 = vector.broadcast %cst_34 : f32 to vector<1x256xf32>
    %72 = arith.addf %70, %71 : vector<1x256xf32>
    %73 = math.rsqrt %72 : vector<1x256xf32>
    %74 = arith.mulf %58, %73 : vector<1x256xf32>
    %75 = vector.broadcast %74 : vector<1x256xf32> to vector<8x256xf32>
    %76 = arith.mulf %65, %75 : vector<8x256xf32>
    %77 = vector.broadcast %59 : vector<1x256xf32> to vector<8x256xf32>
    %78 = arith.addf %76, %77 : vector<8x256xf32>
    %cst_35 = arith.constant 0.000000e+00 : f32
    %79 = vector.broadcast %cst_35 : f32 to vector<8x256xf32>
    %80 = arith.maximumf %78, %79 : vector<8x256xf32>
    %81 = arith.addf %26, %80 : vector<8x256xf32>
    %c0_36 = arith.constant 0 : index
    %c0_37 = arith.constant 0 : index
    %82 = vector.load %arg5[%c0_36, %c0_37] : memref<256x128xbf16, #tpu.memory_space<vmem>>, vector<256x128xbf16>
    %83 = arith.truncf %81 : vector<8x256xf32> to vector<8x256xbf16>
    %cst_38 = arith.constant dense<0.000000e+00> : vector<8x128xf32>
    %84 = tpu.matmul %83, %82, %cst_38 {dimension_numbers = #tpu.dot_dimension_numbers<[1], [0], [0], [1], [0, 0, 1, 1], [], []>} : vector<8x256xbf16>, vector<256x128xbf16>, vector<8x128xf32> -> vector<8x128xf32>
    %c0_39 = arith.constant 0 : index
    %c0_40 = arith.constant 0 : index
    %c0_41 = arith.constant 0 : index
    %85 = vector.load %arg2[%c0_39, %c0_40, %c0_41] : memref<5x8x128xf32, #tpu.memory_space<vmem>>, vector<5x8x128xf32>
    %86 = vector.shape_cast %85 : vector<5x8x128xf32> to vector<40x128xf32>
    %c2_42 = arith.constant 2 : index
    %c0_43 = arith.constant 0 : index
    %c0_44 = arith.constant 0 : index
    %87 = vector.load %arg4[%c2_42, %c0_43, %c0_44] : memref<4x256x256xbf16, #tpu.memory_space<vmem>>, vector<1x256x256xbf16>
    %88 = vector.shape_cast %87 : vector<1x256x256xbf16> to vector<256x256xbf16>
    %c3_45 = arith.constant 3 : index
    %c0_46 = arith.constant 0 : index
    %c0_47 = arith.constant 0 : index
    %89 = vector.load %arg4[%c3_45, %c0_46, %c0_47] : memref<4x256x256xbf16, #tpu.memory_space<vmem>>, vector<1x256x256xbf16>
    %90 = vector.shape_cast %89 : vector<1x256x256xbf16> to vector<256x256xbf16>
    %c0_48 = arith.constant 0 : index
    %c0_49 = arith.constant 0 : index
    %91 = vector.load %arg6[%c0_48, %c0_49] : memref<256x128xbf16, #tpu.memory_space<vmem>>, vector<256x128xbf16>
    %92 = vector.extract_strided_slice %88 {offsets = [0, 0], sizes = [128, 256], strides = [1, 1]} : vector<256x256xbf16> to vector<128x256xbf16>
    %93 = arith.truncf %84 : vector<8x128xf32> to vector<8x128xbf16>
    %cst_50 = arith.constant dense<0.000000e+00> : vector<8x256xf32>
    %94 = tpu.matmul %93, %92, %cst_50 {dimension_numbers = #tpu.dot_dimension_numbers<[1], [0], [0], [1], [0, 0, 1, 1], [], []>} : vector<8x128xbf16>, vector<128x256xbf16>, vector<8x256xf32> -> vector<8x256xf32>
    %95 = vector.extract_strided_slice %88 {offsets = [128, 0], sizes = [128, 256], strides = [1, 1]} : vector<256x256xbf16> to vector<128x256xbf16>
    %96 = arith.truncf %86 : vector<40x128xf32> to vector<40x128xbf16>
    %cst_51 = arith.constant dense<0.000000e+00> : vector<40x256xf32>
    %97 = tpu.matmul %96, %95, %cst_51 {dimension_numbers = #tpu.dot_dimension_numbers<[1], [0], [0], [1], [0, 0, 1, 1], [], []>} : vector<40x128xbf16>, vector<128x256xbf16>, vector<40x256xf32> -> vector<40x256xf32>
    %98 = vector.shape_cast %97 : vector<40x256xf32> to vector<5x8x256xf32>
    %99 = vector.shape_cast %94 : vector<8x256xf32> to vector<1x8x256xf32>
    %100 = vector.broadcast %99 : vector<1x8x256xf32> to vector<5x8x256xf32>
    %101 = arith.addf %98, %100 : vector<5x8x256xf32>
    %c6 = arith.constant 6 : index
    %c0_52 = arith.constant 0 : index
    %102 = vector.load %arg7[%c6, %c0_52] : memref<10x256xf32, #tpu.memory_space<vmem>>, vector<1x256xf32>
    %c7 = arith.constant 7 : index
    %c0_53 = arith.constant 0 : index
    %103 = vector.load %arg7[%c7, %c0_53] : memref<10x256xf32, #tpu.memory_space<vmem>>, vector<1x256xf32>
    %cst_54 = arith.constant dense<0.000000e+00> : vector<5x256xf32>
    %104 = vector.multi_reduction <add>, %101, %cst_54 [1] : vector<5x8x256xf32> to vector<5x256xf32>
    %105 = vector.shape_cast %104 : vector<5x256xf32> to vector<5x1x256xf32>
    %cst_55 = arith.constant 8.000000e+00 : f32
    %106 = vector.broadcast %cst_55 : f32 to vector<5x1x256xf32>
    %107 = arith.divf %105, %106 : vector<5x1x256xf32>
    %108 = vector.broadcast %107 : vector<5x1x256xf32> to vector<5x8x256xf32>
    %109 = arith.subf %101, %108 : vector<5x8x256xf32>
    %110 = arith.mulf %109, %109 : vector<5x8x256xf32>
    %cst_56 = arith.constant dense<0.000000e+00> : vector<5x256xf32>
    %111 = vector.multi_reduction <add>, %110, %cst_56 [1] : vector<5x8x256xf32> to vector<5x256xf32>
    %112 = vector.shape_cast %111 : vector<5x256xf32> to vector<5x1x256xf32>
    %cst_57 = arith.constant 8.000000e+00 : f32
    %113 = vector.broadcast %cst_57 : f32 to vector<5x1x256xf32>
    %114 = arith.divf %112, %113 : vector<5x1x256xf32>
    %cst_58 = arith.constant 9.99999974E-6 : f32
    %115 = vector.broadcast %cst_58 : f32 to vector<5x1x256xf32>
    %116 = arith.addf %114, %115 : vector<5x1x256xf32>
    %117 = math.rsqrt %116 : vector<5x1x256xf32>
    %118 = vector.shape_cast %102 : vector<1x256xf32> to vector<1x1x256xf32>
    %119 = vector.broadcast %118 : vector<1x1x256xf32> to vector<5x1x256xf32>
    %120 = arith.mulf %119, %117 : vector<5x1x256xf32>
    %121 = vector.broadcast %120 : vector<5x1x256xf32> to vector<5x8x256xf32>
    %122 = arith.mulf %109, %121 : vector<5x8x256xf32>
    %123 = vector.shape_cast %103 : vector<1x256xf32> to vector<1x1x256xf32>
    %124 = vector.broadcast %123 : vector<1x1x256xf32> to vector<5x8x256xf32>
    %125 = arith.addf %122, %124 : vector<5x8x256xf32>
    %cst_59 = arith.constant 0.000000e+00 : f32
    %126 = vector.broadcast %cst_59 : f32 to vector<5x8x256xf32>
    %127 = arith.maximumf %125, %126 : vector<5x8x256xf32>
    %128 = vector.shape_cast %127 : vector<5x8x256xf32> to vector<40x256xf32>
    %129 = arith.truncf %128 : vector<40x256xf32> to vector<40x256xbf16>
    %cst_60 = arith.constant dense<0.000000e+00> : vector<40x256xf32>
    %130 = tpu.matmul %129, %90, %cst_60 {dimension_numbers = #tpu.dot_dimension_numbers<[1], [0], [0], [1], [0, 0, 1, 1], [], []>} : vector<40x256xbf16>, vector<256x256xbf16>, vector<40x256xf32> -> vector<40x256xf32>
    %131 = vector.shape_cast %130 : vector<40x256xf32> to vector<5x8x256xf32>
    %c8 = arith.constant 8 : index
    %c0_61 = arith.constant 0 : index
    %132 = vector.load %arg7[%c8, %c0_61] : memref<10x256xf32, #tpu.memory_space<vmem>>, vector<1x256xf32>
    %c9 = arith.constant 9 : index
    %c0_62 = arith.constant 0 : index
    %133 = vector.load %arg7[%c9, %c0_62] : memref<10x256xf32, #tpu.memory_space<vmem>>, vector<1x256xf32>
    %cst_63 = arith.constant dense<0.000000e+00> : vector<5x256xf32>
    %134 = vector.multi_reduction <add>, %131, %cst_63 [1] : vector<5x8x256xf32> to vector<5x256xf32>
    %135 = vector.shape_cast %134 : vector<5x256xf32> to vector<5x1x256xf32>
    %cst_64 = arith.constant 8.000000e+00 : f32
    %136 = vector.broadcast %cst_64 : f32 to vector<5x1x256xf32>
    %137 = arith.divf %135, %136 : vector<5x1x256xf32>
    %138 = vector.broadcast %137 : vector<5x1x256xf32> to vector<5x8x256xf32>
    %139 = arith.subf %131, %138 : vector<5x8x256xf32>
    %140 = arith.mulf %139, %139 : vector<5x8x256xf32>
    %cst_65 = arith.constant dense<0.000000e+00> : vector<5x256xf32>
    %141 = vector.multi_reduction <add>, %140, %cst_65 [1] : vector<5x8x256xf32> to vector<5x256xf32>
    %142 = vector.shape_cast %141 : vector<5x256xf32> to vector<5x1x256xf32>
    %cst_66 = arith.constant 8.000000e+00 : f32
    %143 = vector.broadcast %cst_66 : f32 to vector<5x1x256xf32>
    %144 = arith.divf %142, %143 : vector<5x1x256xf32>
    %cst_67 = arith.constant 9.99999974E-6 : f32
    %145 = vector.broadcast %cst_67 : f32 to vector<5x1x256xf32>
    %146 = arith.addf %144, %145 : vector<5x1x256xf32>
    %147 = math.rsqrt %146 : vector<5x1x256xf32>
    %148 = vector.shape_cast %132 : vector<1x256xf32> to vector<1x1x256xf32>
    %149 = vector.broadcast %148 : vector<1x1x256xf32> to vector<5x1x256xf32>
    %150 = arith.mulf %149, %147 : vector<5x1x256xf32>
    %151 = vector.broadcast %150 : vector<5x1x256xf32> to vector<5x8x256xf32>
    %152 = arith.mulf %139, %151 : vector<5x8x256xf32>
    %153 = vector.shape_cast %133 : vector<1x256xf32> to vector<1x1x256xf32>
    %154 = vector.broadcast %153 : vector<1x1x256xf32> to vector<5x8x256xf32>
    %155 = arith.addf %152, %154 : vector<5x8x256xf32>
    %cst_68 = arith.constant 0.000000e+00 : f32
    %156 = vector.broadcast %cst_68 : f32 to vector<5x8x256xf32>
    %157 = arith.maximumf %155, %156 : vector<5x8x256xf32>
    %158 = vector.extract_strided_slice %91 {offsets = [0, 0], sizes = [128, 128], strides = [1, 1]} : vector<256x128xbf16> to vector<128x128xbf16>
    %159 = arith.truncf %84 : vector<8x128xf32> to vector<8x128xbf16>
    %cst_69 = arith.constant dense<0.000000e+00> : vector<8x128xf32>
    %160 = tpu.matmul %159, %158, %cst_69 {dimension_numbers = #tpu.dot_dimension_numbers<[1], [0], [0], [1], [0, 0, 1, 1], [], []>} : vector<8x128xbf16>, vector<128x128xbf16>, vector<8x128xf32> -> vector<8x128xf32>
    %161 = vector.shape_cast %157 : vector<5x8x256xf32> to vector<40x256xf32>
    %162 = arith.truncf %161 : vector<40x256xf32> to vector<40x256xbf16>
    %cst_70 = arith.constant dense<0.000000e+00> : vector<40x128xf32>
    %163 = tpu.matmul %162, %91, %cst_70 {dimension_numbers = #tpu.dot_dimension_numbers<[1], [0], [0], [1], [0, 0, 1, 1], [], []>} : vector<40x256xbf16>, vector<256x128xbf16>, vector<40x128xf32> -> vector<40x128xf32>
    %164 = vector.shape_cast %163 : vector<40x128xf32> to vector<5x8x128xf32>
    %165 = vector.extract_strided_slice %91 {offsets = [128, 0], sizes = [128, 128], strides = [1, 1]} : vector<256x128xbf16> to vector<128x128xbf16>
    %166 = arith.truncf %86 : vector<40x128xf32> to vector<40x128xbf16>
    %cst_71 = arith.constant dense<0.000000e+00> : vector<40x128xf32>
    %167 = tpu.matmul %166, %165, %cst_71 {dimension_numbers = #tpu.dot_dimension_numbers<[1], [0], [0], [1], [0, 0, 1, 1], [], []>} : vector<40x128xbf16>, vector<128x128xbf16>, vector<40x128xf32> -> vector<40x128xf32>
    %168 = vector.shape_cast %167 : vector<40x128xf32> to vector<5x8x128xf32>
    %169 = arith.addf %164, %168 : vector<5x8x128xf32>
    %170 = vector.shape_cast %160 : vector<8x128xf32> to vector<1x8x128xf32>
    %171 = vector.broadcast %170 : vector<1x8x128xf32> to vector<5x8x128xf32>
    %172 = arith.addf %169, %171 : vector<5x8x128xf32>
    %c0_72 = arith.constant 0 : index
    %c0_73 = arith.constant 0 : index
    %173 = vector.load %arg8[%c0_72, %c0_73] : memref<1x128xf32, #tpu.memory_space<vmem>>, vector<1x128xf32>
    %174 = vector.shape_cast %173 : vector<1x128xf32> to vector<1x1x128xf32>
    %175 = vector.broadcast %174 : vector<1x1x128xf32> to vector<5x8x128xf32>
    %176 = arith.addf %172, %175 : vector<5x8x128xf32>
    %c0_74 = arith.constant 0 : index
    %c0_75 = arith.constant 0 : index
    %c0_76 = arith.constant 0 : index
    %177 = vector.load %arg9[%c0_74, %c0_75, %c0_76] : memref<5x8x128xf32, #tpu.memory_space<vmem>>, vector<5x8x128xf32>
    tpu.vector_store %arg9[%c0_74, %c0_75, %c0_76], %176 {strides = array<i32>} : memref<5x8x128xf32, #tpu.memory_space<vmem>>, vector<5x8x128xf32>,
    return
  }
  func.func @transform_0(%arg0: i32) -> (i32, i32) {
    %c0_i32 = arith.constant 0 : i32
    %c0_i32_0 = arith.constant 0 : i32
    %c0_i32_1 = arith.constant 0 : i32
    return %c0_i32, %c0_i32_0 : i32, i32
  }
  func.func @transform_1(%arg0: i32) -> (i32, i32, i32) {
    %c0_i32 = arith.constant 0 : i32
    %c0_i32_0 = arith.constant 0 : i32
    %c0_i32_1 = arith.constant 0 : i32
    return %arg0, %c0_i32, %c0_i32_0 : i32, i32, i32
  }
  func.func @transform_2(%arg0: i32) -> (i32, i32) {
    %c0_i32 = arith.constant 0 : i32
    %c0_i32_0 = arith.constant 0 : i32
    %c0_i32_1 = arith.constant 0 : i32
    return %c0_i32, %c0_i32_0 : i32, i32
  }
  func.func @transform_3(%arg0: i32) -> (i32, i32, i32) {
    %c0_i32 = arith.constant 0 : i32
    %c0_i32_0 = arith.constant 0 : i32
    %c0_i32_1 = arith.constant 0 : i32
    %c0_i32_2 = arith.constant 0 : i32
    return %c0_i32, %c0_i32_0, %c0_i32_1 : i32, i32, i32
  }
  func.func @transform_4(%arg0: i32) -> (i32, i32) {
    %c0_i32 = arith.constant 0 : i32
    %c0_i32_0 = arith.constant 0 : i32
    %c0_i32_1 = arith.constant 0 : i32
    return %c0_i32, %c0_i32_0 : i32, i32
  }
  func.func @transform_5(%arg0: i32) -> (i32, i32) {
    %c0_i32 = arith.constant 0 : i32
    %c0_i32_0 = arith.constant 0 : i32
    %c0_i32_1 = arith.constant 0 : i32
    return %c0_i32, %c0_i32_0 : i32, i32
  }
  func.func @transform_6(%arg0: i32) -> (i32, i32) {
    %c0_i32 = arith.constant 0 : i32
    %c0_i32_0 = arith.constant 0 : i32
    %c0_i32_1 = arith.constant 0 : i32
    return %c0_i32, %c0_i32_0 : i32, i32
  }
  func.func @transform_7(%arg0: i32) -> (i32, i32) {
    %c0_i32 = arith.constant 0 : i32
    %c0_i32_0 = arith.constant 0 : i32
    %c0_i32_1 = arith.constant 0 : i32
    return %c0_i32, %c0_i32_0 : i32, i32
  }
  func.func @transform_8(%arg0: i32) -> (i32, i32, i32) {
    %c0_i32 = arith.constant 0 : i32
    %c0_i32_0 = arith.constant 0 : i32
    %c0_i32_1 = arith.constant 0 : i32
    return %arg0, %c0_i32, %c0_i32_0 : i32, i32, i32
  }
}

</mosaic_0001>

<bundles_post_ra>
// kernel: disconet_forward.1
= control target key start
LH: loop header
LB: loop body
LE: loop exit
PB: predicated region body
PF: predicated region fallthrough
CT: control target
= control target key end

     0   :  { %s4870_s0 = inlined_call_operand.hbm [shape: f32[8,32], index: 0, kind: input, shape index: {}]   ;;  %s4871_s1 = inlined_call_operand.hbm [shape: f32[10,8,128], index: 1, kind: input, shape index: {}]   ;;  %s4872_s2 = inlined_call_operand.hbm [shape: bf16[32,256], index: 2, kind: input, shape index: {}]   ;;  %s4873_s3 = inlined_call_operand.hbm [shape: bf16[4,256,256], index: 3, kind: input, shape index: {}]   ;;  %s4874_s4 = inlined_call_operand.hbm [shape: bf16[256,128], index: 4, kind: input, shape index: {}]   ;;  %s4875_s5 = inlined_call_operand.hbm [shape: bf16[256,128], index: 5, kind: input, shape index: {}]   ;;  %s4876_s6 = inlined_call_operand.hbm [shape: f32[10,256], index: 6, kind: input, shape index: {}]   ;;  %s4877_s7 = inlined_call_operand.vmem [shape: f32[1,128], index: 7, kind: input, shape index: {}]   ;;  %s4878_s8 = inlined_call_operand.hbm [shape: f32[10,8,128], index: 8, kind: output, shape index: {}]  }
   0x1   :  { %4885 = sst [smem:[#allocation21_spill]] %s4870_s0 }
   0x2   :  { %4886 = sst [smem:[#allocation22_spill]] %s4872_s2 }
   0x3   :  { %13 = vsyncpa [#allocation3], 0 }
   0x4   :  { %14 = vsyncpa [#allocation6], 0 }
   0x5   :  { %16 = vsyncpa [#allocation6 + $0x1], 0 }
   0x6   :  { %17 = vsyncpa [#allocation9], 0 }
   0x7   :  { %18 = vsyncpa [#allocation12], 0 }
   0x8   :  { %19 = vsyncpa [#allocation4], 0 }
   0x9   :  { %21 = vsyncpa [#allocation4 + $0x1], 0  ;;  %s4216_s27 = smov 0   ;;  %s4218_s28 = smov 0  }
   0xa   :  { %s4220_s29 = smov 0   ;;  %s4222_s30 = smov 0  }
   0xb LB: > { %s4151_s9 = smov [#allocation7]   ;;  %s4237_s11 = sadd.s32 4294967295, %s4149_s30   ;;  %s4149_s30 = sphi %s4222_s30, %s4915_s30   ;;  %s4145_s29 = sphi %s4220_s29, %s4914_s29   ;;  %s4141_s28 = sphi %s4218_s28, %s4913_s28   ;;  %s4137_s27 = sphi %s4216_s27, %s4912_s27  }
   0xc   : > { %s254_s10 = sshll.u32 %s4151_s9, 4  ;;  %p3171_p0 = scmp.ge.s32.totalorder %s4149_s30, 1  ;;  %s255_s10 = int_to_ptr.vmem [resolvable:$true] %s254_s10 }
   0xd   : > { %p4879_p1 = scmp.eq.s32.totalorder %s4237_s11, 0  ;;  %p231_p2 = scmp.lt.s32.totalorder %s4149_s30, 3 }
   0xe   : > { %s4152_s13 = smov [#allocation8]   ;;  %s4153_s16 = smov [#allocation11]  }
   0xf   : > { %p4242_p3 = pnand %p3171_p0, %p231_p2  ;;  %s267_s14 = sshll.u32 %s4152_s13, 4  ;;  %s268_s14 = int_to_ptr.vmem [resolvable:$true] %s267_s14 }
  0x10   : > { %s293_s17 = sshll.u32 %s4153_s16, 4  ;;  %s3896_s19 = scalar_lea.vmem %s255_s10, 512  ;;  %s294_s17 = int_to_ptr.vmem [resolvable:$true] %s293_s17 }
  0x11   : > { %s4887_s12 = scalar_select %p4242_p3, 1, 0 }
  0x12   : > { %p3512_p5 = pneg %p4242_p3  ;;  %p3897_p8 = scmp.ne.s32.totalorder %s255_s10, %s3896_s19 }
  0x13   : > { %p3904_p11 = scmp.lt.s32.totalorder %s255_s10, %s255_s10  ;;  %p3905_p12 = scmp.lt.s32.totalorder %s3896_s19, %s3896_s19 }
  0x14   : > { %p4251_p6 = pnand %p3512_p5, %p4879_p1 }
  0x15   : > { %p3906_p13 = por %p3905_p12, %p3904_p11 }
  0x16   : > { %p4257_p7 = pneg %p4251_p6 }
  0x18   : > { %p3899_p9 = pnand %p3897_p8, %p4257_p7 }
  0x1a   : > { %p3900_p10 = pneg %p3899_p9 }
  0x1c   : > { %p3907_p0 = pnand %p3906_p13, %p3900_p10 }
  0x1e   : > { %3910 = shalt.err (!%p3907_p0)
}
  0x1f   : > { %s4881_s20 = smov 128   ;;  %s4882_s21 = smov 8  }
  0x20   : > { %s4890_s2 = sld [smem:[#allocation22_spill]]  ;;  %s3922_s24 = scalar_lea.vmem %s268_s14, 16384 }
  0x21   : > { %p3923_p2 = scmp.ne.s32.totalorder %s268_s14, %s3922_s24  ;;  %p3930_p9 = scmp.lt.s32.totalorder %s268_s14, %s268_s14 }
  0x22   : > { %p3931_p10 = scmp.lt.s32.totalorder %s3922_s24, %s3922_s24 }
  0x23   : > { %p3925_p5 = pnand %p3923_p2, %p4257_p7 }
  0x24   : > { %p3932_p11 = por %p3931_p10, %p3930_p9 }
  0x25   : > { %p3926_p8 = pneg %p3925_p5 }
  0x26   : > { %3518 = dma.hbm_to_vmem [thread:$0]  (!%p4251_p6), %s4890_s2, 512, %s255_s10, [#allocation6], %s4881_s20, %s4881_s20, %s4882_s21  }
  0x27   : > { %p3933_p12 = pnand %p3932_p11, %p3926_p8 }
  0x29   : > { %3936 = shalt.err (!%p3933_p12)
}
  0x2a   : > { %3521 = dma.hbm_to_vmem [thread:$0]  (!%p4251_p6), %s4873_s3, 16384, %s268_s14, [#allocation9], %s4881_s20, %s4881_s20, %s4882_s21  }
  0x2b   : > { %s3948_s9 = scalar_lea.vmem %s294_s17, 2048  ;;  %p3956_p5 = scmp.lt.s32.totalorder %s294_s17, %s294_s17 }
  0x2c   : > { %p3949_p13 = scmp.ne.s32.totalorder %s294_s17, %s3948_s9  ;;  %p3957_p9 = scmp.lt.s32.totalorder %s3948_s9, %s3948_s9 }
  0x2e   : > { %p3951_p0 = pnand %p3949_p13, %p4257_p7  ;;  %p3958_p8 = por %p3957_p9, %p3956_p5 }
  0x30   : > { %p3952_p2 = pneg %p3951_p0 }
  0x32   : > { %p3959_p10 = pnand %p3958_p8, %p3952_p2 }
  0x34   : > { %3962 = shalt.err (!%p3959_p10)
}
  0x35   : > { %s4156_s10 = smov 64   ;;  %s4157_s13 = smov 4  }
  0x36   : > { %3527 = dma.hbm_to_vmem [thread:$0]  (!%p4251_p6), %s4875_s5, 2048, %s294_s17, [#allocation12], %s4156_s10, %s4156_s10, %s4157_s13  }
  0x37   : > { %s4158_s19 = smov [#allocation2]   ;;  %s4159_s23 = smov [#allocation10]  }
  0x38   : > { %s244_s22 = sshll.u32 %s4158_s19, 4  ;;  %s280_s24 = sshll.u32 %s4159_s23, 4  ;;  %s245_s22 = int_to_ptr.vmem [resolvable:$true] %s244_s22  ;;  %s281_s24 = int_to_ptr.vmem [resolvable:$true] %s280_s24 }
  0x39   : > { %s3974_s25 = scalar_lea.vmem %s245_s22, 128  ;;  %p3982_p0 = scmp.lt.s32.totalorder %s245_s22, %s245_s22 }
  0x3a   : > { %p3975_p11 = scmp.ne.s32.totalorder %s245_s22, %s3974_s25  ;;  %p3983_p2 = scmp.lt.s32.totalorder %s3974_s25, %s3974_s25 }
  0x3c   : > { %p3977_p12 = pnand %p3975_p11, %p4257_p7  ;;  %p3984_p5 = por %p3983_p2, %p3982_p0 }
  0x3e   : > { %p3978_p13 = pneg %p3977_p12 }
  0x40   : > { %p3985_p9 = pnand %p3984_p5, %p3978_p13 }
  0x42   : > { %3988 = shalt.err (!%p3985_p9)
}
  0x43   : > { %s4891_s0 = sld [smem:[#allocation21_spill]]  ;;  %s4000_s17 = scalar_lea.vmem %s281_s24, 2048 }
  0x44   : > { %p4001_p8 = scmp.ne.s32.totalorder %s281_s24, %s4000_s17  ;;  %p4008_p11 = scmp.lt.s32.totalorder %s281_s24, %s281_s24 }
  0x45   : > { %p4009_p12 = scmp.lt.s32.totalorder %s4000_s17, %s4000_s17 }
  0x46   : > { %p4003_p10 = pnand %p4001_p8, %p4257_p7 }
  0x47   : > { %p4010_p1 = por %p4009_p12, %p4008_p11 }
  0x48   : > { %p4004_p4 = pneg %p4003_p10 }
  0x49   : > { %3515 = dma.hbm_to_vmem [thread:$0]  (!%p4251_p6), %s4891_s0, 128, %s245_s22, [#allocation3]  }
  0x4a   : > { %p4011_p3 = pnand %p4010_p1, %p4004_p4 }
  0x4c   : > { %4014 = shalt.err (!%p4011_p3)
}
  0x4d   : > { %3524 = dma.hbm_to_vmem [thread:$0]  (!%p4251_p6), %s4874_s4, 2048, %s281_s24, [#allocation9], %s4156_s10, %s4156_s10, %s4157_s13  }
  0x4e   : > { %s4160_s19 = smov [#allocation13]  }
  0x4f   : > { %s306_s22 = sshll.u32 %s4160_s19, 4  ;;  %s307_s22 = int_to_ptr.vmem [resolvable:$true] %s306_s22 }
  0x50   : > { %s4026_s23 = scalar_lea.vmem %s307_s22, 512  ;;  %p4034_p1 = scmp.lt.s32.totalorder %s307_s22, %s307_s22 }
  0x51   : > { %p4027_p13 = scmp.ne.s32.totalorder %s307_s22, %s4026_s23  ;;  %p4035_p3 = scmp.lt.s32.totalorder %s4026_s23, %s4026_s23 }
  0x53   : > { %p4029_p0 = pnand %p4027_p13, %p4257_p7  ;;  %p4036_p4 = por %p4035_p3, %p4034_p1 }
  0x55   : > { %p4030_p2 = pneg %p4029_p0 }
  0x57   : > { %p4037_p5 = pnand %p4036_p4, %p4030_p2 }
  0x59   : > { %4040 = shalt.err (!%p4037_p5)
}
  0x5a   : > { %s4161_s25 = smov 256   ;;  %s4162_s18 = smov 16  }
  0x5b   : > { %3530 = dma.hbm_to_vmem [thread:$0]  (!%p4251_p6), %s4876_s6, 512, %s307_s22, [#allocation12], %s4161_s25, %s4161_s25, %s4162_s18  }
  0x5c   : > { %s3170_s24 = sadd.s32 4294967294, %s4149_s30   ;;  %s4317_s26 = sadd.s32 1, %s4149_s30  }
  0x5d   : > { %s52_s9 = ssub.s32 %s4149_s30, %s4317_s26  ;;  %s55_s17 = sadd.s32 1, %s4145_s29 }
  0x5e   : > { %p53_p7 = scmp.eq.s32.totalorder %s52_s9, 0  ;;  %p62_p9 = scmp.ne.s32.totalorder %s4145_s29, %s4141_s28 }
  0x5f   : > { %p63_p8 = scmp.eq.s32.totalorder %s4149_s30, 0  ;;  %p68_p10 = scmp.ne.s32.totalorder %s4141_s28, %s4137_s27 }
  0x60   : > { %s4328_s14 = scalar_select %p53_p7, %s4145_s29, %s55_s17  }
  0x61   : > { %p64_p11 = por %p63_p8, %p62_p9  ;;  %p4892_p12 = scmp.eq.s32.totalorder %s4237_s11, 0 }
  0x62   : > { %p218_p6 = scmp.eq.s32.totalorder %s4237_s11, 1  ;;  %p224_p0 = scmp.eq.s32.totalorder %s3170_s24, 1 }
  0x63   : > { %p4332_p13 = por %p4892_p12, %p68_p10  ;;  %p3545_p2 = scmp.lt.s32.totalorder %s4149_s30, 2 }
  0x64   : > { %s323_s16 = sand.u32 1, %s4149_s30   ;;  %p4339_p1 = por %p218_p6, %p62_p9 }
  0x65   : > { %s4893_s15 = scalar_select %p4332_p13, 1, 0 }
  0x66   : > { %s4894_s19 = scalar_select %p4339_p1, 1, 0 }
  0x67   : > { %p4343_p3 = por %p224_p0, %p68_p10  ;;  %s325_s23 = sand.u32 1, %s4145_s29  }
  0x68   : > { %s3482_s25 = smul.u32 40, %s325_s23  ;;  %p4348_p4 = pnand %p3545_p2, %p64_p11 }
  0x69   : > { %s4895_s22 = scalar_select %p4343_p3, 1, 0 }
  0x6a   : > { %s3356_s10 = smul.u32 640, %s4149_s30  ;;  %s327_s17 = scalar_lea.vmem [#allocation5], %s3482_s25 }
  0x6b   : > { %s334_s20 = sshll.u32 %s327_s17, 4  ;;  %s4360_s21 = scalar_lea.sflag [#allocation6], %s323_s16  ;;  %s4358_s20 = int_to_ptr.vmem [resolvable:$true] %s334_s20 }
  0x6c   : > { %s4356_s9 = scalar_lea.hbm %s4871_s1, %s3356_s10  ;;  %p4043_p7 = pneg %p4348_p4 }
  0x6d   : > { %s4041_s23 = scalar_lea.hbm %s4356_s9, 640  ;;  %s4046_s10 = scalar_lea.hbm %s4871_s1, 1280 }
  0x6e   : > { %p4042_p5 = scmp.ne.s32.totalorder %s4356_s9, %s4041_s23  ;;  %p4047_p10 = scmp.lt.s32.totalorder %s4356_s9, %s4871_s1 }
  0x6f   : > { %p4048_p11 = scmp.lt.s32.totalorder %s4046_s10, %s4041_s23 }
  0x70   : > { %p4044_p9 = pnand %p4043_p7, %p4042_p5 }
  0x71   : > { %p4049_p12 = por %p4048_p11, %p4047_p10 }
  0x72   : > { %p4045_p8 = pneg %p4044_p9 }
  0x74   : > { %p4050_p6 = pnand %p4049_p12, %p4045_p8 }
  0x76   : > { %4053 = shalt.err (!%p4050_p6)
}
  0x77   : > { %s4054_s16 = scalar_lea.vmem %s4358_s20, 640  ;;  %s4163_s25 = smov [#allocation5]  }
  0x78   : > { %p4055_p0 = scmp.ne.s32.totalorder %s4358_s20, %s4054_s16  ;;  %s4059_s17 = sshll.u32 %s4163_s25, 4  ;;  %s4060_s17 = int_to_ptr.vmem [resolvable:$false] %s4059_s17 }
  0x79   : > { %s4061_s0 = scalar_lea.vmem %s4060_s17, 1280  ;;  %p4062_p9 = scmp.lt.s32.totalorder %s4358_s20, %s4060_s17 }
  0x7a   : > { %p4057_p2 = pnand %p4055_p0, %p4043_p7  ;;  %p4063_p3 = scmp.lt.s32.totalorder %s4061_s0, %s4054_s16 }
  0x7c   : > { %p4058_p5 = pneg %p4057_p2  ;;  %p4064_p1 = por %p4063_p3, %p4062_p9 }
  0x7e   : > { %p4065_p13 = pnand %p4064_p1, %p4058_p5 }
  0x80   : > { %4068 = shalt.err (!%p4065_p13)
}
  0x81   : > { %s4897_s2 = smov 8   ;;  %s4898_s23 = smov 128  }
  0x82   : > { %3534 = dma.hbm_to_vmem [thread:$0]  (!%p4348_p4), %s4356_s9, 640, %s4358_s20, %s4360_s21, %s4898_s23, %s4898_s23, %s4897_s2  }
  0x83   : > { %p4899_p7 = scmp.ne.s32.totalorder %s4887_s12, 0 }
  0x84   : > { %p4900_p8 = scmp.eq.s32.totalorder (!%p4899_p7), %s4237_s11, 0 }
  0x85   : > { %346 = sbr.rel (%p4899_p7) target bundleno = 1932 (0x78c), region = 52 }
  0x8a   : > { %4112 = dma.done.wait (%p4900_p8), [#allocation3], 128   ;;  %p4901_p10 = pmov %p4900_p8 }
  0x8b   : > { %s352_s18 = sand.u32 1, %s4237_s11   ;;  %s354_s10 = sand.u32 1, %s4141_s28  }
  0x8c   : > { %4114 = vsyncadd (%p4901_p10), [#allocation3], 4294967168  ;;  %s4394_s13 = smul.u32 40, %s354_s10  ;;  %s353_s20 = scalar_lea.sflag [#allocation6], %s352_s18 }
  0x8d   : > { %p4902_p13 = scmp.ne.s32.totalorder %s4893_s15, 0 }
  0x8e   : > { %s4397_s21 = scalar_lea.vmem [#allocation5], %s4394_s13 }
  0x8f   : > { %4116 = dma.done.wait (%p4902_p13), %s353_s20, 640  }
  0x90   : > { %4118 = vsyncadd (%p4902_p13), %s353_s20, 4294966656  ;;  %p4903_p1 = pmov %p4900_p8 }
  0x92   : > { %4120 = dma.done.wait (%p4903_p1), [#allocation6], 512   ;;  %p4904_p3 = pmov %p4903_p1 }
  0x93   : > { %p4905_p4 = pmov %p4903_p1 }
  0x94   : > { %4122 = vsyncadd (%p4904_p3), [#allocation6], 4294966784 }
  0x95   : > { %4124 = dma.done.wait (%p4905_p4), [#allocation9], 18432   ;;  %p4906_p11 = pmov %p4903_p1 }
  0x96   : > { %p4907_p12 = pmov %p4903_p1 }
  0x97   : > { %4126 = vsyncadd (%p4906_p11), [#allocation9], 4294948864 }
  0x98   : > { %4128 = dma.done.wait (%p4907_p12), [#allocation12], 2560   ;;  %p4908_p6 = pmov %p4903_p1 }
  0x99   : > { %v4164_v0 = vmov 0   ;;  %v3603_v1 = vld [vmem:[#allocation7 + $0x14] ss:$8 sps:$4 sm:$0xff]   ;;  %v3605_v2 = vld [vmem:[#allocation7 + $0x10] ss:$8 sps:$4 sm:$0xff]   ;;  %v412_v5 = vld [vmem:[#allocation2] sm:$0xff] }
  0x9a   : > { %4130 = vsyncadd (%p4908_p6), [#allocation12], 4294964736  ;;  %474 = vmatprep.mubr.bf16.mxu0 %v4164_v0  ;;  %454 = vmatprep.subr.bf16.mxu0 %v3603_v1  ;;  %v3606_v3 = vld [vmem:[#allocation7 + $0x4] ss:$8 sps:$4 sm:$0xff]   ;;  %v3608_v4 = vld [vmem:[#allocation7] ss:$8 sps:$4 sm:$0xff]   ;;  %v417_v6 = vpack.c.bf16 %v412_v5, %v412_v5 }
  0x9b   : > { %455 = vmatpush1.bf16.msra.mxu0 %v3605_v2  ;;  %vm438_vm0 = vcmask 261120   ;;  %v3609_v7 = vld [vmem:[#allocation8 + $0x74] ss:$8 sps:$4 sm:$0xff]   ;;  %v3611_v8 = vld [vmem:[#allocation8 + $0x70] ss:$8 sps:$4 sm:$0xff]   ;;  %vm4167_vm1 = vmmov 0  }
  0x9c   : > { %456 = vmatprep.subr.bf16.mxu0 %v3606_v3  ;;  %764 = vmatprep.subr.bf16.mxu1 %v3609_v7  ;;  %v3612_v9 = vld [vmem:[#allocation8 + $0x64] ss:$8 sps:$4 sm:$0xff]   ;;  %v3614_v10 = vld [vmem:[#allocation8 + $0x60] ss:$8 sps:$4 sm:$0xff]   ;;  %v3615_v11 = vld [vmem:[#allocation8 + $0x54] ss:$8 sps:$4 sm:$0xff]  }
  0x9d   : > { %765 = vmatpush1.bf16.msra.mxu1 %v3611_v8  ;;  %v3617_v12 = vld [vmem:[#allocation8 + $0x50] ss:$8 sps:$4 sm:$0xff]   ;;  %v3618_v13 = vld [vmem:[#allocation8 + $0x44] ss:$8 sps:$4 sm:$0xff]   ;;  %v3620_v14 = vld [vmem:[#allocation8 + $0x40] ss:$8 sps:$4 sm:$0xff]  }
  0x9e   : > { %766 = vmatprep.subr.bf16.mxu1 %v3612_v9  ;;  %v3621_v15 = vld [vmem:[#allocation8 + $0x34] ss:$8 sps:$4 sm:$0xff]   ;;  %v3623_v16 = vld [vmem:[#allocation8 + $0x30] ss:$8 sps:$4 sm:$0xff]   ;;  %v3624_v17 = vld [vmem:[#allocation8 + $0x24] ss:$8 sps:$4 sm:$0xff]  }
  0x9f   : > { %457 = vmatpush1.bf16.msra.mxu0 %v3608_v4  ;;  %v3626_v18 = vld [vmem:[#allocation8 + $0x20] ss:$8 sps:$4 sm:$0xff]   ;;  %v3627_v19 = vld [vmem:[#allocation8 + $0x14] ss:$8 sps:$4 sm:$0xff]   ;;  %v3629_v20 = vld [vmem:[#allocation8 + $0x10] ss:$8 sps:$4 sm:$0xff]  }
  0xa0   : > { %v3630_v21 = vld [vmem:[#allocation8 + $0x4] ss:$8 sps:$4 sm:$0xff]   ;;  %v3632_v22 = vld [vmem:[#allocation8] ss:$8 sps:$4 sm:$0xff]   ;;  %v3633_v23 = vld [vmem:[#allocation8 + $0xf4] ss:$8 sps:$4 sm:$0xff]  }
  0xa1   : > { %767 = vmatpush1.bf16.msra.mxu1 %v3614_v10  ;;  %v3635_v24 = vld [vmem:[#allocation8 + $0xf0] ss:$8 sps:$4 sm:$0xff]   ;;  %v3636_v25 = vld [vmem:[#allocation8 + $0xe4] ss:$8 sps:$4 sm:$0xff]   ;;  %v3638_v26 = vld [vmem:[#allocation8 + $0xe0] ss:$8 sps:$4 sm:$0xff]  }
  0xa2   : > { %3191 = vmatmul.mubr.msk.bf16.vlgmr.msra.gmra.mxu0 %vm438_vm0, %v417_v6  ;;  %768 = vmatprep.subr.bf16.mxu1 %v3615_v11  ;;  %v3639_v27 = vld [vmem:[#allocation8 + $0xd4] ss:$8 sps:$4 sm:$0xff]   ;;  %v3641_v28 = vld [vmem:[#allocation8 + $0xd0] ss:$8 sps:$4 sm:$0xff]   ;;  %v3642_v29 = vld [vmem:[#allocation8 + $0xc4] ss:$8 sps:$4 sm:$0xff]  }
  0xa3   : > { %v3644_v30 = vld [vmem:[#allocation8 + $0xc0] ss:$8 sps:$4 sm:$0xff]   ;;  %v3645_v31 = vld [vmem:[#allocation8 + $0xb4] ss:$8 sps:$4 sm:$0xff]   ;;  %v3647_v32 = vld [vmem:[#allocation8 + $0xb0] ss:$8 sps:$4 sm:$0xff]  }
  0xa4   : > { %v3648_v33 = vld [vmem:[#allocation8 + $0xa4] ss:$8 sps:$4 sm:$0xff]   ;;  %v3650_v34 = vld [vmem:[#allocation8 + $0xa0] ss:$8 sps:$4 sm:$0xff]   ;;  %v3651_v35 = vld [vmem:[#allocation8 + $0x94] ss:$8 sps:$4 sm:$0xff]  }
  0xa5   : > { %769 = vmatpush1.bf16.msra.mxu1 %v3617_v12  ;;  %v3653_v36 = vld [vmem:[#allocation8 + $0x90] ss:$8 sps:$4 sm:$0xff]   ;;  %v3654_v37 = vld [vmem:[#allocation8 + $0x84] ss:$8 sps:$4 sm:$0xff]   ;;  %v3656_v38 = vld [vmem:[#allocation8 + $0x80] ss:$8 sps:$4 sm:$0xff]  }
  0xa6   : > { %770 = vmatprep.subr.bf16.mxu1 %v3618_v13  ;;  %s4807_s9 = scalar_lea.vmem [#allocation14], %s4394_s13  ;;  %s3357_s16 = smul.u32 640, %s4237_s11 }
  0xa7   : > { %s3038_s24 = sshll.u32 %s4807_s9, 4  ;;  %s4829_s2 = scalar_lea.sflag [#allocation4], %s354_s10  ;;  %s4818_s24 = int_to_ptr.vmem [resolvable:$true] %s3038_s24 }
  0xa8   : > { %s4824_s0 = scalar_lea.hbm %s4878_s8, %s3357_s16  ;;  %s4069_s23 = scalar_lea.vmem %s4818_s24, 640 }
  0xa9   : > { %771 = vmatpush1.bf16.msra.mxu1 %v3620_v14  ;;  %v4165_v14 = vmov 1966171168   ;;  %p4070_p0 = scmp.ne.s32.totalorder %s4818_s24, %s4069_s23  ;;  %p4909_p2 = scmp.ne.s32.totalorder %s4894_s19, 0 }
  0xaa   : > { %772 = vmatprep.subr.bf16.mxu1 %v3621_v15  ;;  %v527_v15 = vunpack.c.l.s4 %v4165_v14  ;;  %s4168_s11 = smov [#allocation14]  }
  0xab   : > { %p4071_p5 = pnand %p4070_p0, %p4909_p2  ;;  %s4073_s18 = sshll.u32 %s4168_s11, 4  ;;  %s4074_s18 = int_to_ptr.vmem [resolvable:$false] %s4073_s18 }
  0xac   : > { %s4075_s13 = scalar_lea.vmem %s4074_s18, 1280  ;;  %p4076_p7 = scmp.lt.s32.totalorder %s4818_s24, %s4074_s18 }
  0xad   : > { %773 = vmatpush1.bf16.msra.mxu1 %v3623_v16  ;;  %v529_v16 = vlaneseq  ;;  %p4072_p9 = pneg %p4071_p5  ;;  %p4077_p8 = scmp.lt.s32.totalorder %s4075_s13, %s4069_s23 }
  0xae   : > { %774 = vmatprep.subr.bf16.mxu1 %v3624_v17  ;;  %v528_v17 = vunpack.c.0.s8 %v527_v15 }
  0xaf   : > { %p4078_p10 = por %p4077_p8, %p4076_p7 }
  0xb1   : > { %775 = vmatpush1.bf16.msra.mxu1 %v3626_v18  ;;  %v530_v18 = vshrl.u32 %v529_v16, 7  ;;  %p4079_p13 = pnand %p4078_p10, %p4072_p9 }
  0xb2   : > { %776 = vmatprep.subr.bf16.mxu1 %v3627_v19 }
  0xb5   : > { %777 = vmatpush1.bf16.msra.mxu1 %v3629_v20  ;;  %v4416_v20 = vsub.s32 %v528_v17, %v530_v18 }
  0xb6   : > { %778 = vmatprep.subr.bf16.mxu1 %v3630_v21 }
  0xb9   : > { %779 = vmatpush1.bf16.msra.mxu1 %v3632_v22 }
  0xba   : > { %780 = vmatprep.subr.bf16.mxu1 %v3633_v23 }
  0xbd   : > { %781 = vmatpush2.bf16.msra.mxu1 %v3635_v24  ;;  %v483_v24 = vld [vmem:[#allocation13] ss:$8 sm:$0x3] }
  0xbe   : > { %782 = vmatprep.subr.bf16.mxu1 %v3636_v25 }
  0xc1   : > { %783 = vmatpush2.bf16.msra.mxu1 %v3638_v26  ;;  %v4420_v26 = vsub.s32 0, %v530_v18 }
  0xc2   : > { %784 = vmatprep.subr.bf16.mxu1 %v3639_v27  ;;  %v4422_v27 = vsub.s32 1, %v530_v18 }
  0xc5   : > { %785 = vmatpush2.bf16.msra.mxu1 %v3641_v28  ;;  %v485_v28 = vld [vmem:[#allocation13 + $0x1] ss:$8 sm:$0x3] }
  0xc6   : > { %786 = vmatprep.subr.bf16.mxu1 %v3642_v29 }
  0xc9   : > { %787 = vmatpush2.bf16.msra.mxu1 %v3644_v30 }
  0xca   : > { %788 = vmatprep.subr.bf16.mxu1 %v3645_v31  ;;  %v559_v31 = vrot.slane %v485_v28, %v4420_v26 }
  0xcd   : > { %789 = vmatpush2.bf16.msra.mxu1 %v3647_v32  ;;  %v563_v32 = vrot.slane %v485_v28, %v4422_v27 }
  0xce   : > { %790 = vmatprep.subr.bf16.mxu1 %v3648_v33 }
  0xd1   : > { %791 = vmatpush2.bf16.msra.mxu1 %v3650_v34 }
  0xd2   : > { %792 = vmatprep.subr.bf16.mxu1 %v3651_v35 }
  0xd5   : > { %793 = vmatpush2.bf16.msra.mxu1 %v3653_v36 }
  0xd6   : > { %794 = vmatprep.subr.bf16.mxu1 %v3654_v37 }
  0xd9   : > { %795 = vmatpush2.bf16.msra.mxu1 %v3656_v38 }
 0x162   : > { %v476_v39 = vpop.f32.mrf.mxu0 }
 0x163   : > { %v486_v40 = vrot.slane %v476_v39, 4 }
 0x164   : > { %v478_v41 = vpop.f32.mrf.mxu0 }
 0x165   : > { %v487_v42 = vadd.f32 %v486_v40, %v476_v39  ;;  %v492_v43 = vrot.slane %v478_v41, 4 }
 0x166   : > { %v480_v44 = vpop.f32.mrf.mxu0 }
 0x167   : > { %v488_v45 = vrot.slane %v487_v42, 2  ;;  %v493_v46 = vadd.f32 %v492_v43, %v478_v41  ;;  %v3657_v43 = vld [vmem:[#allocation8 + $0x170] ss:$8 sps:$4 sm:$0xff]   ;;  %v3662_v44 = vld [vmem:[#allocation8 + $0x164] ss:$8 sps:$4 sm:$0xff]  }
 0x168   : > { %v481_v47 = vpop.f32.mrf.mxu0 }
 0x169   : > { %v489_v48 = vadd.f32 %v488_v45, %v487_v42  ;;  %v494_v49 = vrot.slane %v493_v46, 2  ;;  %v3659_v42 = vld [vmem:[#allocation8 + $0x174] ss:$8 sps:$4 sm:$0xff]   ;;  %v3660_v45 = vld [vmem:[#allocation8 + $0x160] ss:$8 sps:$4 sm:$0xff]  }
 0x16a   : > { %1087 = vmatprep.subr.bf16.mxu0 %v3659_v42  ;;  %v3663_v47 = vld [vmem:[#allocation8 + $0x150] ss:$8 sps:$4 sm:$0xff]  }
 0x16b   : > { %v490_v50 = vrot.slane %v489_v48, 1  ;;  %v495_v51 = vadd.f32 %v494_v49, %v493_v46  ;;  %1088 = vmatpush1.bf16.msra.mxu0 %v3657_v43  ;;  %v3665_v46 = vld [vmem:[#allocation8 + $0x154] ss:$8 sps:$4 sm:$0xff]   ;;  %v3666_v49 = vld [vmem:[#allocation8 + $0x140] ss:$8 sps:$4 sm:$0xff]  }
 0x16c   : > { %1089 = vmatprep.subr.bf16.mxu0 %v3662_v44 }
 0x16d   : > { %v491_v52 = vadd.f32 %v490_v50, %v489_v48  ;;  %v496_v53 = vrot.slane %v495_v51, 1  ;;  %v3668_v48 = vld [vmem:[#allocation8 + $0x144] ss:$8 sps:$4 sm:$0xff]   ;;  %v3671_v50 = vld [vmem:[#allocation8 + $0x134] ss:$8 sps:$4 sm:$0xff]  }
 0x16f   : > { %v499_v54 = vmul.f32 0.125, %v491_v52  ;;  %v497_v55 = vadd.f32 %v496_v53, %v495_v51  ;;  %1090 = vmatpush1.bf16.msra.mxu0 %v3660_v45  ;;  %v3669_v51 = vld [vmem:[#allocation8 + $0x130] ss:$8 sps:$4 sm:$0xff]   ;;  %v3674_v52 = vld [vmem:[#allocation8 + $0x124] ss:$8 sps:$4 sm:$0xff]  }
 0x170   : > { %1091 = vmatprep.subr.bf16.mxu0 %v3665_v46  ;;  %v3672_v53 = vld [vmem:[#allocation8 + $0x120] ss:$8 sps:$4 sm:$0xff]  }
 0x171   : > { %v501_v56 = vsub.f32 %v476_v39, %v499_v54  ;;  %v500_v57 = vmul.f32 0.125, %v497_v55  ;;  %v3677_v54 = vld [vmem:[#allocation8 + $0x114] ss:$8 sps:$4 sm:$0xff]   ;;  %v3675_v55 = vld [vmem:[#allocation8 + $0x110] ss:$8 sps:$4 sm:$0xff]  }
 0x173   : > { %v503_v58 = vmul.f32 %v501_v56, %v501_v56  ;;  %v502_v59 = vsub.f32 %v478_v41, %v500_v57  ;;  %1092 = vmatpush1.bf16.msra.mxu0 %v3663_v47  ;;  %v3678_v57 = vld [vmem:[#allocation8 + $0x100] ss:$8 sps:$4 sm:$0xff]  }
 0x174   : > { %1093 = vmatprep.subr.bf16.mxu0 %v3668_v48 }
 0x175   : > { %v505_v60 = vrot.slane %v503_v58, 4  ;;  %v504_v61 = vmul.f32 %v502_v59, %v502_v59 }
 0x177   : > { %v506_v62 = vadd.f32 %v505_v60, %v503_v58  ;;  %v511_v63 = vrot.slane %v504_v61, 4  ;;  %1094 = vmatpush1.bf16.msra.mxu0 %v3666_v49  ;;  %v3683_v58 = vld [vmem:[#allocation8 + $0x1f4] ss:$8 sps:$4 sm:$0xff]   ;;  %v3686_v60 = vld [vmem:[#allocation8 + $0x1e4] ss:$8 sps:$4 sm:$0xff]  }
 0x178   : > { %1095 = vmatprep.subr.bf16.mxu0 %v3671_v50 }
 0x179   : > { %v507_v1 = vrot.slane %v506_v62, 2  ;;  %v512_v2 = vadd.f32 %v511_v63, %v504_v61  ;;  %v3684_v61 = vld [vmem:[#allocation8 + $0x1e0] ss:$8 sps:$4 sm:$0xff]   ;;  %v3687_v63 = vld [vmem:[#allocation8 + $0x1d0] ss:$8 sps:$4 sm:$0xff]  }
 0x17b   : > { %v508_v3 = vadd.f32 %v507_v1, %v506_v62  ;;  %v513_v4 = vrot.slane %v512_v2, 2  ;;  %1096 = vmatpush1.bf16.msra.mxu0 %v3669_v51  ;;  %v3689_v62 = vld [vmem:[#allocation8 + $0x1d4] ss:$8 sps:$4 sm:$0xff]   ;;  %v3692_v1 = vld [vmem:[#allocation8 + $0x1c4] ss:$8 sps:$4 sm:$0xff]  }
 0x17c   : > { %1097 = vmatprep.subr.bf16.mxu0 %v3674_v52 }
 0x17d   : > { %v509_v5 = vrot.slane %v508_v3, 1  ;;  %v514_v6 = vadd.f32 %v513_v4, %v512_v2  ;;  %v3690_v2 = vld [vmem:[#allocation8 + $0x1c0] ss:$8 sps:$4 sm:$0xff]   ;;  %v3693_v4 = vld [vmem:[#allocation8 + $0x1b0] ss:$8 sps:$4 sm:$0xff]  }
 0x17f   : > { %v510_v7 = vadd.f32 %v509_v5, %v508_v3  ;;  %v515_v8 = vrot.slane %v514_v6, 1  ;;  %1098 = vmatpush1.bf16.msra.mxu0 %v3672_v53  ;;  %v3695_v3 = vld [vmem:[#allocation8 + $0x1b4] ss:$8 sps:$4 sm:$0xff]   ;;  %v3698_v5 = vld [vmem:[#allocation8 + $0x1a4] ss:$8 sps:$4 sm:$0xff]  }
 0x180   : > { %1099 = vmatprep.subr.bf16.mxu0 %v3677_v54 }
 0x181   : > { %v517_v9 = vmul.f32 0.125, %v510_v7  ;;  %v516_v10 = vadd.f32 %v515_v8, %v514_v6  ;;  %v3696_v6 = vld [vmem:[#allocation8 + $0x1a0] ss:$8 sps:$4 sm:$0xff]   ;;  %v3701_v7 = vld [vmem:[#allocation8 + $0x194] ss:$8 sps:$4 sm:$0xff]  }
 0x182   : > { %v3699_v8 = vld [vmem:[#allocation8 + $0x190] ss:$8 sps:$4 sm:$0xff]  }
 0x183   : > { %v519_v11 = vadd.f32 1e-05, %v517_v9  ;;  %v518_v12 = vmul.f32 0.125, %v516_v10  ;;  %1100 = vmatpush1.bf16.msra.mxu0 %v3675_v55  ;;  %v3704_v9 = vld [vmem:[#allocation8 + $0x184] ss:$8 sps:$4 sm:$0xff]  }
 0x184   : > { %v3702_v10 = vld [vmem:[#allocation8 + $0x180] ss:$8 sps:$4 sm:$0xff]  }
 0x185   : > { %v520_v13 = vadd.f32 1e-05, %v518_v12  ;;  %3833 = vrsqrt.f32 %v519_v11 }
 0x187   : > { %3835 = vrsqrt.f32 %v520_v13 }
 0x192   : > { %v3834_v19 = vpop.eup %3833 }
 0x194   : > { %v3836_v21 = vpop.eup %3835 }
 0x195   : > { %v525_v22 = vcombine.low %v3834_v19, %v3836_v21 }
 0x197   : > { %v532_v23 = vrot.slane %v525_v22, %v4416_v20 }
 0x199   : > { %v539_v25 = vrot.slane %v532_v23, %v4416_v20 }
 0x19b   : > { %v541_v29 = vmul.f32 %v539_v25, %v483_v24 }
 0x19d   : > { %v550_v30 = vrot.slane %v541_v29, %v4422_v27  ;;  %v546_v33 = vrot.slane %v541_v29, %v4420_v26 }
 0x19f   : > { %v554_v34 = vmul.f32 %v550_v30, %v502_v59  ;;  %v553_v35 = vmul.f32 %v546_v33, %v501_v56  ;;  %v3680_v56 = vld [vmem:[#allocation8 + $0x104] ss:$8 sps:$4 sm:$0xff]   ;;  %v3681_v59 = vld [vmem:[#allocation8 + $0x1f0] ss:$8 sps:$4 sm:$0xff]  }
 0x1a0   : > { %1101 = vmatprep.subr.bf16.mxu0 %v3680_v56 }
 0x1a1   : > { %v567_v36 = vadd.f32 %v563_v32, %v554_v34  ;;  %v566_v37 = vadd.f32 %v559_v31, %v553_v35  ;;  %1102 = vmatpush1.bf16.msra.mxu0 %v3678_v57 }
 0x1a2   : > { %1103 = vmatprep.subr.bf16.mxu0 %v3683_v58  ;;  %v806_v58 = vld [vmem:[#allocation13 + $0x2] ss:$8 sm:$0x3] }
 0x1a3   : > { %v4428_v38 = vmax.f32 %v567_v36, 0.0  ;;  %v4430_v39 = vmax.f32 %v566_v37, 0.0 }
 0x1a5   : > { %v603_v40 = vpack.c.bf16 %v4428_v38, %v4428_v38  ;;  %v602_v41 = vpack.c.bf16 %v4430_v39, %v4430_v39  ;;  %1104 = vmatpush2.bf16.msra.mxu0 %v3681_v59 }
 0x1a6   : > { %1105 = vmatprep.subr.bf16.mxu0 %v3686_v60  ;;  %v808_v60 = vld [vmem:[#allocation13 + $0x3] ss:$8 sm:$0x3] }
 0x1a7   : > { %796 = vmatprep.mubr.bf16.mxu1 %v603_v40 }
 0x1a8   : > { %797 = vmatmul.mubr.bf16.vlgmr.msra.gmra.mxu1 %v602_v41 }
 0x1a9   : > { %1106 = vmatpush2.bf16.msra.mxu0 %v3684_v61 }
 0x1aa   : > { %1107 = vmatprep.subr.bf16.mxu0 %v3689_v62 }
 0x1ad   : > { %1108 = vmatpush2.bf16.msra.mxu0 %v3687_v63 }
 0x1ae   : > { %1109 = vmatprep.subr.bf16.mxu0 %v3692_v1  ;;  %v881_v1 = vrot.slane %v808_v60, %v4420_v26 }
 0x1b1   : > { %1110 = vmatpush2.bf16.msra.mxu0 %v3690_v2  ;;  %v885_v2 = vrot.slane %v808_v60, %v4422_v27 }
 0x1b2   : > { %1111 = vmatprep.subr.bf16.mxu0 %v3695_v3 }
 0x1b5   : > { %1112 = vmatpush2.bf16.msra.mxu0 %v3693_v4 }
 0x1b6   : > { %1113 = vmatprep.subr.bf16.mxu0 %v3698_v5 }
 0x1b9   : > { %1114 = vmatpush2.bf16.msra.mxu0 %v3696_v6 }
 0x1ba   : > { %1115 = vmatprep.subr.bf16.mxu0 %v3701_v7 }
 0x1bd   : > { %1116 = vmatpush2.bf16.msra.mxu0 %v3699_v8 }
 0x1be   : > { %1117 = vmatprep.subr.bf16.mxu0 %v3704_v9 }
 0x1c1   : > { %1118 = vmatpush2.bf16.msra.mxu0 %v3702_v10 }
 0x268   : > { %v798_v11 = vpop.f32.mrf.mxu1 }
 0x269   : > { %v809_v12 = vrot.slane %v798_v11, 4 }
 0x26a   : > { %v800_v13 = vpop.f32.mrf.mxu1 }
 0x26b   : > { %v810_v14 = vadd.f32 %v809_v12, %v798_v11  ;;  %v815_v15 = vrot.slane %v800_v13, 4  ;;  %v3706_v12 = vld [vmem:[#allocation10 + $0x38] sm:$0xff]  }
 0x26c   : > { %v802_v16 = vpop.f32.mrf.mxu1 }
 0x26d   : > { %v811_v17 = vrot.slane %v810_v14, 2  ;;  %v816_v18 = vadd.f32 %v815_v15, %v800_v13  ;;  %v3709_v15 = vld [vmem:[#allocation10 + $0x68] sm:$0xff]  }
 0x26e   : > { %v803_v19 = vpop.f32.mrf.mxu1  ;;  %v3710_v16 = vld [vmem:[#allocation10 + $0x28] sm:$0xff]  }
 0x26f   : > { %v812_v21 = vadd.f32 %v811_v17, %v810_v14  ;;  %v817_v22 = vrot.slane %v816_v18, 2  ;;  %v3708_v14 = vld [vmem:[#allocation10 + $0x30] sm:$0xff]   ;;  %v3711_v17 = vld [vmem:[#allocation10 + $0x60] sm:$0xff]   ;;  %v3713_v19 = vld [vmem:[#allocation10 + $0x58] sm:$0xff]  }
 0x271   : > { %v813_v23 = vrot.slane %v812_v21, 1  ;;  %v818_v24 = vadd.f32 %v817_v22, %v816_v18  ;;  %v3712_v18 = vld [vmem:[#allocation10 + $0x20] sm:$0xff]   ;;  %v3715_v22 = vld [vmem:[#allocation10 + $0x50] sm:$0xff]  }
 0x273   : > { %v814_v25 = vadd.f32 %v813_v23, %v812_v21  ;;  %v819_v28 = vrot.slane %v818_v24, 1  ;;  %v3714_v21 = vld [vmem:[#allocation10 + $0x18] sm:$0xff]   ;;  %v3716_v23 = vld [vmem:[#allocation10 + $0x10] sm:$0xff]  }
 0x275   : > { %v821_v29 = vmul.f32 0.125, %v814_v25  ;;  %v820_v30 = vadd.f32 %v819_v28, %v818_v24  ;;  %v3717_v24 = vld [vmem:[#allocation10 + $0x48] sm:$0xff]   ;;  %v3719_v28 = vld [vmem:[#allocation10 + $0x40] sm:$0xff]  }
 0x276   : > { %v3718_v25 = vld [vmem:[#allocation10 + $0x8] sm:$0xff]  }
 0x277   : > { %v823_v31 = vsub.f32 %v798_v11, %v821_v29  ;;  %v822_v32 = vmul.f32 0.125, %v820_v30  ;;  %v3705_v11 = vld [vmem:[#allocation10 + $0x78] sm:$0xff]   ;;  %v3720_v29 = vld [vmem:[#allocation10] sm:$0xff]  }
 0x278   : > { %3358 = vmatprep.subr.bf16.mxu1 %v3705_v11  ;;  %v3723_v30 = vld [vmem:[#allocation8 + $0x2f4] ss:$8 sps:$4 sm:$0xff]  }
 0x279   : > { %v825_v33 = vmul.f32 %v823_v31, %v823_v31  ;;  %v824_v34 = vsub.f32 %v800_v13, %v822_v32  ;;  %3359 = vmatpush3.bf16.msra.mxu1 %v3706_v12  ;;  %v3707_v13 = vld [vmem:[#allocation10 + $0x70] sm:$0xff]  }
 0x27a   : > { %3360 = vmatprep.subr.bf16.mxu1 %v3707_v13  ;;  %v3747_v32 = vld [vmem:[#allocation8 + $0x274] ss:$8 sps:$4 sm:$0xff]  }
 0x27b   : > { %v827_v35 = vrot.slane %v825_v33, 4  ;;  %v826_v36 = vmul.f32 %v824_v34, %v824_v34  ;;  %1571 = vmatprep.subr.bf16.mxu0 %v3747_v32 }
 0x27d   : > { %v828_v37 = vadd.f32 %v827_v35, %v825_v33  ;;  %v833_v40 = vrot.slane %v826_v36, 4  ;;  %3361 = vmatpush3.bf16.msra.mxu1 %v3708_v14  ;;  %v3749_v33 = vld [vmem:[#allocation8 + $0x260] ss:$8 sps:$4 sm:$0xff]   ;;  %v3753_v35 = vld [vmem:[#allocation8 + $0x250] ss:$8 sps:$4 sm:$0xff]  }
 0x27e   : > { %3362 = vmatprep.subr.bf16.mxu1 %v3709_v15 }
 0x27f   : > { %v829_v41 = vrot.slane %v828_v37, 2  ;;  %v834_v42 = vadd.f32 %v833_v40, %v826_v36  ;;  %v3755_v36 = vld [vmem:[#allocation8 + $0x254] ss:$8 sps:$4 sm:$0xff]   ;;  %v3759_v40 = vld [vmem:[#allocation8 + $0x244] ss:$8 sps:$4 sm:$0xff]  }
 0x281   : > { %v830_v43 = vadd.f32 %v829_v41, %v828_v37  ;;  %v835_v44 = vrot.slane %v834_v42, 2  ;;  %3363 = vmatpush3.bf16.msra.mxu1 %v3710_v16  ;;  %v3757_v37 = vld [vmem:[#allocation8 + $0x240] ss:$8 sps:$4 sm:$0xff]   ;;  %v3761_v41 = vld [vmem:[#allocation8 + $0x230] ss:$8 sps:$4 sm:$0xff]  }
 0x282   : > { %3364 = vmatprep.subr.bf16.mxu1 %v3711_v17 }
 0x283   : > { %v831_v45 = vrot.slane %v830_v43, 1  ;;  %v836_v46 = vadd.f32 %v835_v44, %v834_v42  ;;  %v3763_v42 = vld [vmem:[#allocation8 + $0x234] ss:$8 sps:$4 sm:$0xff]   ;;  %v3767_v44 = vld [vmem:[#allocation8 + $0x224] ss:$8 sps:$4 sm:$0xff]  }
 0x285   : > { %v832_v47 = vadd.f32 %v831_v45, %v830_v43  ;;  %v837_v48 = vrot.slane %v836_v46, 1  ;;  %3365 = vmatpush3.bf16.msra.mxu1 %v3712_v18  ;;  %v3765_v43 = vld [vmem:[#allocation8 + $0x220] ss:$8 sps:$4 sm:$0xff]   ;;  %v3769_v45 = vld [vmem:[#allocation8 + $0x210] ss:$8 sps:$4 sm:$0xff]  }
 0x286   : > { %3366 = vmatprep.subr.bf16.mxu1 %v3713_v19 }
 0x287   : > { %v839_v49 = vmul.f32 0.125, %v832_v47  ;;  %v838_v50 = vadd.f32 %v837_v48, %v836_v46  ;;  %v3771_v46 = vld [vmem:[#allocation8 + $0x214] ss:$8 sps:$4 sm:$0xff]  }
 0x289   : > { %v841_v51 = vadd.f32 1e-05, %v839_v49  ;;  %v840_v52 = vmul.f32 0.125, %v838_v50  ;;  %3367 = vmatpush3.bf16.msra.mxu1 %v3714_v21 }
 0x28a   : > { %3368 = vmatprep.subr.bf16.mxu1 %v3715_v22 }
 0x28b   : > { %v842_v53 = vadd.f32 1e-05, %v840_v52  ;;  %3837 = vrsqrt.f32 %v841_v51 }
 0x28d   : > { %3839 = vrsqrt.f32 %v842_v53  ;;  %3369 = vmatpush3.bf16.msra.mxu1 %v3716_v23 }
 0x28e   : > { %3370 = vmatprep.subr.bf16.mxu1 %v3717_v24 }
 0x291   : > { %3371 = vmatpush3.bf16.msra.mxu1 %v3718_v25 }
 0x292   : > { %3372 = vmatprep.subr.bf16.mxu1 %v3719_v28 }
 0x295   : > { %3373 = vmatpush3.bf16.msra.mxu1 %v3720_v29  ;;  %v1129_v29 = vld [vmem:[#allocation13 + $0x4] ss:$8 sm:$0x3] }
 0x296   : > { %1695 = vmatprep.subr.bf16.mxu1 %v3723_v30 }
 0x298   : > { %v3838_v54 = vpop.eup %3837 }
 0x29a   : > { %v3840_v55 = vpop.eup %3839 }
 0x29b   : > { %v847_v56 = vcombine.low %v3838_v54, %v3840_v55 }
 0x29d   : > { %v854_v57 = vrot.slane %v847_v56, %v4416_v20 }
 0x29f   : > { %v861_v59 = vrot.slane %v854_v57, %v4416_v20 }
 0x2a1   : > { %v863_v61 = vmul.f32 %v861_v59, %v806_v58 }
 0x2a3   : > { %v868_v62 = vrot.slane %v863_v61, %v4420_v26  ;;  %v872_v63 = vrot.slane %v863_v61, %v4422_v27 }
 0x2a5   : > { %v876_v3 = vmul.f32 %v872_v63, %v824_v34  ;;  %v875_v4 = vmul.f32 %v868_v62, %v823_v31  ;;  %v3745_v31 = vld [vmem:[#allocation8 + $0x270] ss:$8 sps:$4 sm:$0xff]   ;;  %v3751_v34 = vld [vmem:[#allocation8 + $0x264] ss:$8 sps:$4 sm:$0xff]  }
 0x2a7   : > { %v889_v5 = vadd.f32 %v885_v2, %v876_v3  ;;  %v888_v6 = vadd.f32 %v881_v1, %v875_v4 }
 0x2a9   : > { %v891_v7 = vmax.f32 %v889_v5, 0.0  ;;  %v890_v8 = vmax.f32 %v888_v6, 0.0 }
 0x2ab   : > { %v926_v9 = vpack.c.bf16 %v891_v7, %v891_v7  ;;  %v925_v10 = vpack.c.bf16 %v890_v8, %v890_v8 }
 0x2ad   : > { %1119 = vmatprep.mubr.bf16.mxu0 %v926_v9 }
 0x2ae   : > { %1120 = vmatmul.mubr.bf16.vlgmr.msra.gmra.mxu0 %v925_v10 }
 0x2af   : > { %1603 = vmatprep.mubr.bf16.mxu0 %v4164_v0  ;;  %1572 = vmatpush1.bf16.msra.mxu0 %v3745_v31  ;;  %v1131_v31 = vld [vmem:[#allocation13 + $0x5] ss:$8 sm:$0x3] }
 0x2b0   : > { %1573 = vmatprep.subr.bf16.mxu0 %v3751_v34 }
 0x2b3   : > { %1574 = vmatpush1.bf16.msra.mxu0 %v3749_v33 }
 0x2b4   : > { %1575 = vmatprep.subr.bf16.mxu0 %v3755_v36  ;;  %v1208_v36 = vrot.slane %v1131_v31, %v4422_v27 }
 0x2b7   : > { %1576 = vmatpush1.bf16.msra.mxu0 %v3753_v35  ;;  %v1204_v35 = vrot.slane %v1131_v31, %v4420_v26 }
 0x2b8   : > { %1577 = vmatprep.subr.bf16.mxu0 %v3759_v40 }
 0x2bb   : > { %1578 = vmatpush1.bf16.msra.mxu0 %v3757_v37 }
 0x2bc   : > { %1579 = vmatprep.subr.bf16.mxu0 %v3763_v42 }
 0x2bf   : > { %1580 = vmatpush1.bf16.msra.mxu0 %v3761_v41 }
 0x2c0   : > { %1581 = vmatprep.subr.bf16.mxu0 %v3767_v44 }
 0x2c3   : > { %1582 = vmatpush1.bf16.msra.mxu0 %v3765_v43 }
 0x2c4   : > { %1583 = vmatprep.subr.bf16.mxu0 %v3771_v46 }
 0x2c7   : > { %1584 = vmatpush1.bf16.msra.mxu0 %v3769_v45 }
 0x36e   : > { %v1121_v47 = vpop.f32.mrf.mxu0 }
 0x36f   : > { %v1132_v48 = vrot.slane %v1121_v47, 4 }
 0x370   : > { %v1123_v49 = vpop.f32.mrf.mxu0 }
 0x371   : > { %v1133_v50 = vadd.f32 %v1132_v48, %v1121_v47  ;;  %v1138_v51 = vrot.slane %v1123_v49, 4 }
 0x372   : > { %v1125_v52 = vpop.f32.mrf.mxu0 }
 0x373   : > { %v1134_v53 = vrot.slane %v1133_v50, 2  ;;  %v1139_v54 = vadd.f32 %v1138_v51, %v1123_v49  ;;  %v3724_v51 = vld [vmem:[#allocation8 + $0x2e0] ss:$8 sps:$4 sm:$0xff]   ;;  %v3729_v52 = vld [vmem:[#allocation8 + $0x2d4] ss:$8 sps:$4 sm:$0xff]  }
 0x374   : > { %v1126_v55 = vpop.f32.mrf.mxu0 }
 0x375   : > { %v1135_v56 = vadd.f32 %v1134_v53, %v1133_v50  ;;  %v1140_v57 = vrot.slane %v1139_v54, 2  ;;  %v3726_v50 = vld [vmem:[#allocation8 + $0x2e4] ss:$8 sps:$4 sm:$0xff]   ;;  %v3727_v53 = vld [vmem:[#allocation8 + $0x2d0] ss:$8 sps:$4 sm:$0xff]  }
 0x376   : > { %v3733_v55 = vld [vmem:[#allocation8 + $0x2b0] ss:$8 sps:$4 sm:$0xff]  }
 0x377   : > { %v1136_v58 = vrot.slane %v1135_v56, 1  ;;  %v1141_v59 = vadd.f32 %v1140_v57, %v1139_v54  ;;  %v3732_v54 = vld [vmem:[#allocation8 + $0x2c4] ss:$8 sps:$4 sm:$0xff]   ;;  %v3736_v57 = vld [vmem:[#allocation8 + $0x2a0] ss:$8 sps:$4 sm:$0xff]  }
 0x379   : > { %v1137_v60 = vadd.f32 %v1136_v58, %v1135_v56  ;;  %v1142_v61 = vrot.slane %v1141_v59, 1  ;;  %v3738_v56 = vld [vmem:[#allocation8 + $0x2a4] ss:$8 sps:$4 sm:$0xff]   ;;  %v3741_v58 = vld [vmem:[#allocation8 + $0x294] ss:$8 sps:$4 sm:$0xff]  }
 0x37b   : > { %v1144_v62 = vmul.f32 0.125, %v1137_v60  ;;  %v1143_v63 = vadd.f32 %v1142_v61, %v1141_v59  ;;  %v3739_v59 = vld [vmem:[#allocation8 + $0x290] ss:$8 sps:$4 sm:$0xff]   ;;  %v3744_v60 = vld [vmem:[#allocation8 + $0x284] ss:$8 sps:$4 sm:$0xff]  }
 0x37c   : > { %v3742_v61 = vld [vmem:[#allocation8 + $0x280] ss:$8 sps:$4 sm:$0xff]  }
 0x37d   : > { %v1146_v1 = vsub.f32 %v1121_v47, %v1144_v62  ;;  %v1145_v2 = vmul.f32 0.125, %v1143_v63  ;;  %v1387_v62 = vld [vmem:[%s4397_s21] sm:$0xff]  ;;  %v1388_v63 = vld [vmem:[%s4397_s21 + $0x8] sm:$0xff] }
 0x37f   : > { %v1148_v3 = vmul.f32 %v1146_v1, %v1146_v1  ;;  %v1147_v4 = vsub.f32 %v1123_v49, %v1145_v2  ;;  %v3721_v49 = vld [vmem:[#allocation8 + $0x2f0] ss:$8 sps:$4 sm:$0xff]  }
 0x380   : > { %v4456_v2 = vld [vmem:[#allocation11 + $0x38] sm:$0xff]  }
 0x381   : > { %v1150_v5 = vrot.slane %v1148_v3, 4  ;;  %v1149_v6 = vmul.f32 %v1147_v4, %v1147_v4 }
 0x383   : > { %v1151_v7 = vadd.f32 %v1150_v5, %v1148_v3  ;;  %v1156_v8 = vrot.slane %v1149_v6, 4  ;;  %v4166_v3 = vmov 0.0   ;;  %v1389_v5 = vld [vmem:[%s4397_s21 + $0x10] sm:$0xff] }
 0x385   : > { %v1152_v9 = vrot.slane %v1151_v7, 2  ;;  %v1157_v10 = vadd.f32 %v1156_v8, %v1149_v6  ;;  %v1390_v6 = vld [vmem:[%s4397_s21 + $0x18] sm:$0xff] }
 0x386   : > { %v4470_v8 = vld [vmem:[#allocation11 + $0x28] sm:$0xff]  }
 0x387   : > { %v1153_v11 = vadd.f32 %v1152_v9, %v1151_v7  ;;  %v1158_v12 = vrot.slane %v1157_v10, 2  ;;  %v4467_v7 = vpack.c.bf16 %v1390_v6, %v1389_v5  ;;  %v4475_v9 = vld [vmem:[#allocation11 + $0x20] sm:$0xff]  }
 0x388   : > { %v3818_v5 = vld [vmem:[#allocation8 + $0x3a4] ss:$8 sps:$4 sm:$0xff]   ;;  %v3816_v6 = vld [vmem:[#allocation8 + $0x3a0] ss:$8 sps:$4 sm:$0xff]  }
 0x389   : > { %v1154_v13 = vrot.slane %v1153_v11, 1  ;;  %v1159_v14 = vadd.f32 %v1158_v12, %v1157_v10  ;;  %v1391_v10 = vld [vmem:[%s4397_s21 + $0x20] sm:$0xff] }
 0x38a   : > { %v4483_v12 = vld [vmem:[#allocation11 + $0x18] sm:$0xff]  }
 0x38b   : > { %v1155_v15 = vadd.f32 %v1154_v13, %v1153_v11  ;;  %v1160_v16 = vrot.slane %v1159_v14, 1  ;;  %v4480_v11 = vpack.c.bf16 %v1391_v10, %v1391_v10  ;;  %v4488_v13 = vld [vmem:[#allocation11 + $0x10] sm:$0xff]  }
 0x38c   : > { %v3821_v10 = vld [vmem:[#allocation8 + $0x394] ss:$8 sps:$4 sm:$0xff]  }
 0x38d   : > { %v1162_v17 = vmul.f32 0.125, %v1155_v15  ;;  %v1161_v18 = vadd.f32 %v1160_v16, %v1159_v14  ;;  %v3775_v14 = vld [vmem:[#allocation8 + $0x204] ss:$8 sps:$4 sm:$0xff]   ;;  %v3773_v15 = vld [vmem:[#allocation8 + $0x200] ss:$8 sps:$4 sm:$0xff]  }
 0x38e   : > { %v4497_v16 = vld [vmem:[#allocation11] sm:$0xff]   ;;  %1585 = vmatprep.subr.bf16.mxu0 %v3775_v14  ;;  %v3819_v14 = vld [vmem:[#allocation8 + $0x390] ss:$8 sps:$4 sm:$0xff]  }
 0x38f   : > { %v1164_v19 = vadd.f32 1e-05, %v1162_v17  ;;  %v1163_v21 = vmul.f32 0.125, %v1161_v18  ;;  %1586 = vmatpush1.bf16.msra.mxu0 %v3773_v15  ;;  %v3824_v15 = vld [vmem:[#allocation8 + $0x384] ss:$8 sps:$4 sm:$0xff]  }
 0x391   : > { %v1165_v22 = vadd.f32 1e-05, %v1163_v21  ;;  %3841 = vrsqrt.f32 %v1164_v19 }
 0x393   : > { %3843 = vrsqrt.f32 %v1165_v22 }
 0x39e   : > { %v3842_v23 = vpop.eup %3841 }
 0x3a0   : > { %v3844_v24 = vpop.eup %3843 }
 0x3a1   : > { %v1170_v25 = vcombine.low %v3842_v23, %v3844_v24 }
 0x3a3   : > { %v1177_v28 = vrot.slane %v1170_v25, %v4416_v20 }
 0x3a5   : > { %v1184_v30 = vrot.slane %v1177_v28, %v4416_v20 }
 0x3a7   : > { %v1186_v32 = vmul.f32 %v1184_v30, %v1129_v29 }
 0x3a9   : > { %v1191_v33 = vrot.slane %v1186_v32, %v4420_v26  ;;  %v1195_v34 = vrot.slane %v1186_v32, %v4422_v27 }
 0x3ab   : > { %v1199_v37 = vmul.f32 %v1195_v34, %v1147_v4  ;;  %v1198_v40 = vmul.f32 %v1191_v33, %v1146_v1  ;;  %v4454_v1 = vpack.c.bf16 %v1388_v63, %v1387_v62  ;;  %v4461_v4 = vld [vmem:[#allocation11 + $0x30] sm:$0xff]  }
 0x3ac   : > { %v3815_v62 = vld [vmem:[#allocation8 + $0x3b4] ss:$8 sps:$4 sm:$0xff]   ;;  %v3813_v63 = vld [vmem:[#allocation8 + $0x3b0] ss:$8 sps:$4 sm:$0xff]  }
 0x3ad   : > { %v1212_v41 = vadd.f32 %v1208_v36, %v1199_v37  ;;  %v1211_v42 = vadd.f32 %v1204_v35, %v1198_v40  ;;  %v3779_v40 = vld [vmem:[#allocation8 + $0x374] ss:$8 sps:$4 sm:$0xff]  }
 0x3ae   : > { %2307 = vmatprep.subr.bf16.mxu0 %v3779_v40 }
 0x3af   : > { %v1214_v43 = vmax.f32 %v1212_v41, 0.0  ;;  %v1213_v44 = vmax.f32 %v1211_v42, 0.0  ;;  %v3777_v41 = vld [vmem:[#allocation8 + $0x370] ss:$8 sps:$4 sm:$0xff]   ;;  %v3782_v42 = vld [vmem:[#allocation8 + $0x364] ss:$8 sps:$4 sm:$0xff]  }
 0x3b1   : > { %v1216_v45 = vadd.f32 %v1214_v43, %v4428_v38  ;;  %v1215_v46 = vadd.f32 %v1213_v44, %v4430_v39  ;;  %v3730_v38 = vld [vmem:[#allocation8 + $0x2c0] ss:$8 sps:$4 sm:$0xff]   ;;  %v3735_v39 = vld [vmem:[#allocation8 + $0x2b4] ss:$8 sps:$4 sm:$0xff]  }
 0x3b2   : > { %v3780_v43 = vld [vmem:[#allocation8 + $0x360] ss:$8 sps:$4 sm:$0xff]   ;;  %v3785_v44 = vld [vmem:[#allocation8 + $0x354] ss:$8 sps:$4 sm:$0xff]  }
 0x3b3   : > { %v1250_v47 = vpack.c.bf16 %v1216_v45, %v1216_v45  ;;  %v1249_v48 = vpack.c.bf16 %v1215_v46, %v1215_v46  ;;  %v3783_v45 = vld [vmem:[#allocation8 + $0x350] ss:$8 sps:$4 sm:$0xff]   ;;  %v3788_v46 = vld [vmem:[#allocation8 + $0x344] ss:$8 sps:$4 sm:$0xff]  }
 0x3b5   : > { %1379 = vmatprep.mubr.bf16.mxu1 %v1250_v47  ;;  %v3786_v47 = vld [vmem:[#allocation8 + $0x340] ss:$8 sps:$4 sm:$0xff]  }
 0x3b6   : > { %1380 = vmatmul.mubr.bf16.vlgmr.msra.gmra.mxu1 %v1249_v48  ;;  %v3791_v48 = vld [vmem:[#allocation8 + $0x334] ss:$8 sps:$4 sm:$0xff]  }
 0x3b7   : > { %1696 = vmatpush1.bf16.msra.mxu1 %v3721_v49  ;;  %1727 = vmatprep.mubr.bf16.mxu1 %v4164_v0  ;;  %v3789_v49 = vld [vmem:[#allocation8 + $0x330] ss:$8 sps:$4 sm:$0xff]  }
 0x3b8   : > { %1697 = vmatprep.subr.bf16.mxu1 %v3726_v50  ;;  %v3794_v50 = vld [vmem:[#allocation8 + $0x324] ss:$8 sps:$4 sm:$0xff]  }
 0x3bb   : > { %1698 = vmatpush1.bf16.msra.mxu1 %v3724_v51  ;;  %v3792_v51 = vld [vmem:[#allocation8 + $0x320] ss:$8 sps:$4 sm:$0xff]  }
 0x3bc   : > { %1699 = vmatprep.subr.bf16.mxu1 %v3729_v52  ;;  %v3797_v52 = vld [vmem:[#allocation8 + $0x314] ss:$8 sps:$4 sm:$0xff]  }
 0x3bf   : > { %1700 = vmatpush1.bf16.msra.mxu1 %v3727_v53  ;;  %v3795_v53 = vld [vmem:[#allocation8 + $0x310] ss:$8 sps:$4 sm:$0xff]  }
 0x3c0   : > { %1701 = vmatprep.subr.bf16.mxu1 %v3732_v54  ;;  %v3800_v54 = vld [vmem:[#allocation8 + $0x304] ss:$8 sps:$4 sm:$0xff]  }
 0x3c3   : > { %1702 = vmatpush1.bf16.msra.mxu1 %v3730_v38  ;;  %v3798_v38 = vld [vmem:[#allocation8 + $0x300] ss:$8 sps:$4 sm:$0xff]  }
 0x3c4   : > { %1703 = vmatprep.subr.bf16.mxu1 %v3735_v39  ;;  %v3803_v39 = vld [vmem:[#allocation8 + $0x3f4] ss:$8 sps:$4 sm:$0xff]  }
 0x3c7   : > { %1704 = vmatpush1.bf16.msra.mxu1 %v3733_v55  ;;  %v3801_v55 = vld [vmem:[#allocation8 + $0x3f0] ss:$8 sps:$4 sm:$0xff]  }
 0x3c8   : > { %1705 = vmatprep.subr.bf16.mxu1 %v3738_v56  ;;  %v3806_v56 = vld [vmem:[#allocation8 + $0x3e4] ss:$8 sps:$4 sm:$0xff]  }
 0x3cb   : > { %1706 = vmatpush1.bf16.msra.mxu1 %v3736_v57  ;;  %v3804_v57 = vld [vmem:[#allocation8 + $0x3e0] ss:$8 sps:$4 sm:$0xff]  }
 0x3cc   : > { %1707 = vmatprep.subr.bf16.mxu1 %v3741_v58  ;;  %v3809_v58 = vld [vmem:[#allocation8 + $0x3d4] ss:$8 sps:$4 sm:$0xff]  }
 0x3cf   : > { %1708 = vmatpush1.bf16.msra.mxu1 %v3739_v59  ;;  %v3807_v59 = vld [vmem:[#allocation8 + $0x3d0] ss:$8 sps:$4 sm:$0xff]  }
 0x3d0   : > { %1709 = vmatprep.subr.bf16.mxu1 %v3744_v60  ;;  %v3812_v60 = vld [vmem:[#allocation8 + $0x3c4] ss:$8 sps:$4 sm:$0xff]  }
 0x3d3   : > { %1710 = vmatpush1.bf16.msra.mxu1 %v3742_v61  ;;  %v3810_v61 = vld [vmem:[#allocation8 + $0x3c0] ss:$8 sps:$4 sm:$0xff]  }
 0x3d4   : > { %3434 = vmatprep.subr.bf16.mxu1 %v4166_v3 }
 0x3d6   : > { %1728 = vmatmul.mubr.bf16.vlgmr.msra.gmra.mxu1 %v4454_v1 }
 0x3d7   : > { %3435 = vmatpush3.bf16.msra.mxu1 %v4456_v2  ;;  %1737 = vmatprep.mubr.bf16.mxu1 %v4164_v0 }
 0x3d8   : > { %3436 = vmatprep.subr.bf16.mxu1 %v4166_v3 }
 0x3db   : > { %3437 = vmatpush3.bf16.msra.mxu1 %v4461_v4 }
 0x3dc   : > { %3438 = vmatprep.subr.bf16.mxu1 %v4166_v3 }
 0x3de   : > { %1738 = vmatmul.mubr.bf16.gmra.mxu1 %v4467_v7 }
 0x3df   : > { %3439 = vmatpush3.bf16.msra.mxu1 %v4470_v8  ;;  %1747 = vmatprep.mubr.bf16.mxu1 %v4164_v0  ;;  %v4493_v0 = vld [vmem:[#allocation11 + $0x8] sm:$0xff]  }
 0x3e0   : > { %3440 = vmatprep.subr.bf16.mxu1 %v4166_v3 }
 0x3e3   : > { %3441 = vmatpush3.bf16.msra.mxu1 %v4475_v9 }
 0x3e4   : > { %3442 = vmatprep.subr.bf16.mxu1 %v4166_v3 }
 0x3e6   : > { %1748 = vmatmul.mubr.bf16.gmra.mxu1 %v4480_v11 }
 0x3e7   : > { %3443 = vmatpush3.bf16.msra.mxu1 %v4483_v12  ;;  %3450 = vmatprep.mubr.msk.bf16.mxu1 %vm4167_vm1, %v4166_v3 }
 0x3e8   : > { %3444 = vmatprep.subr.bf16.mxu1 %v4166_v3 }
 0x3eb   : > { %3445 = vmatpush3.bf16.msra.mxu1 %v4488_v13 }
 0x3ec   : > { %3446 = vmatprep.subr.bf16.mxu1 %v4166_v3 }
 0x3ef   : > { %3447 = vmatpush3.bf16.msra.mxu1 %v4493_v0 }
 0x3f0   : > { %3448 = vmatprep.subr.bf16.mxu1 %v4166_v3 }
 0x3f3   : > { %3449 = vmatpush3.bf16.msra.mxu1 %v4497_v16 }
 0x476   : > { %v3374_v17 = vpop.f32.mrf.mxu1 }
 0x478   : > { %v3375_v18 = vpop.f32.mrf.mxu1 }
 0x479   : > { %v3376_v19 = vadd.f32 %v3375_v18, %v3374_v17  ;;  %v3822_v17 = vld [vmem:[#allocation8 + $0x380] ss:$8 sps:$4 sm:$0xff]  }
 0x47a   : > { %v3377_v21 = vpop.f32.mrf.mxu1 }
 0x47b   : > { %v1490_v22 = vpack.c.bf16 %v3376_v19, %v3376_v19 }
 0x47c   : > { %v3378_v23 = vpop.f32.mrf.mxu1 }
 0x47d   : > { %1604 = vmatmul.mubr.bf16.vlgmr.msra.gmra.mxu0 %v1490_v22  ;;  %3451 = vmatmul.mubr.bf16.vlgmr.msra.gmra.mxu1 %v1490_v22 }
 0x47e   : > { %2308 = vmatpush1.bf16.msra.mxu0 %v3777_v41 }
 0x47f   : > { %2309 = vmatprep.subr.bf16.mxu0 %v3782_v42 }
 0x482   : > { %2310 = vmatpush1.bf16.msra.mxu0 %v3780_v43 }
 0x483   : > { %2311 = vmatprep.subr.bf16.mxu0 %v3785_v44 }
 0x486   : > { %2312 = vmatpush1.bf16.msra.mxu0 %v3783_v45 }
 0x487   : > { %2313 = vmatprep.subr.bf16.mxu0 %v3788_v46 }
 0x48a   : > { %2314 = vmatpush1.bf16.msra.mxu0 %v3786_v47 }
 0x48b   : > { %2315 = vmatprep.subr.bf16.mxu0 %v3791_v48 }
 0x48e   : > { %2316 = vmatpush1.bf16.msra.mxu0 %v3789_v49 }
 0x48f   : > { %2317 = vmatprep.subr.bf16.mxu0 %v3794_v50 }
 0x492   : > { %2318 = vmatpush1.bf16.msra.mxu0 %v3792_v51 }
 0x493   : > { %2319 = vmatprep.subr.bf16.mxu0 %v3797_v52 }
 0x496   : > { %v4502_v24 = vpop.f32.mrf.mxu1  ;;  %2320 = vmatpush1.bf16.msra.mxu0 %v3795_v53 }
 0x497   : > { %2321 = vmatprep.subr.bf16.mxu0 %v3800_v54 }
 0x498   : > { %v4504_v25 = vpop.f32.mrf.mxu1 }
 0x49a   : > { %v4506_v28 = vpop.f32.mrf.mxu1  ;;  %2322 = vmatpush1.bf16.msra.mxu0 %v3798_v38 }
 0x49b   : > { %2323 = vmatprep.subr.bf16.mxu0 %v3803_v39 }
 0x49c   : > { %v4508_v29 = vpop.f32.mrf.mxu1 }
 0x49e   : > { %v4510_v30 = vpop.f32.mrf.mxu1  ;;  %2324 = vmatpush2.bf16.msra.mxu0 %v3801_v55 }
 0x49f   : > { %2325 = vmatprep.subr.bf16.mxu0 %v3806_v56 }
 0x4a0   : > { %v4512_v31 = vpop.f32.mrf.mxu1 }
 0x4a2   : > { %v4514_v32 = vpop.f32.mrf.mxu1  ;;  %2326 = vmatpush2.bf16.msra.mxu0 %v3804_v57 }
 0x4a3   : > { %2327 = vmatprep.subr.bf16.mxu0 %v3809_v58 }
 0x4a4   : > { %v4516_v33 = vpop.f32.mrf.mxu1 }
 0x4a6   : > { %v4518_v34 = vpop.f32.mrf.mxu1  ;;  %2328 = vmatpush2.bf16.msra.mxu0 %v3807_v59 }
 0x4a7   : > { %2329 = vmatprep.subr.bf16.mxu0 %v3812_v60 }
 0x4a8   : > { %v4520_v35 = vpop.f32.mrf.mxu1 }
 0x4aa   : > { %v1753_v36 = vpop.f32.mrf.mxu1  ;;  %2330 = vmatpush2.bf16.msra.mxu0 %v3810_v61 }
 0x4ab   : > { %2331 = vmatprep.subr.bf16.mxu0 %v3815_v62 }
 0x4ac   : > { %v1754_v37 = vpop.f32.mrf.mxu1 }
 0x4ae   : > { %2332 = vmatpush2.bf16.msra.mxu0 %v3813_v63 }
 0x4af   : > { %2333 = vmatprep.subr.bf16.mxu0 %v3818_v5 }
 0x4b2   : > { %2334 = vmatpush2.bf16.msra.mxu0 %v3816_v6 }
 0x4b3   : > { %2335 = vmatprep.subr.bf16.mxu0 %v3821_v10 }
 0x4b6   : > { %2336 = vmatpush2.bf16.msra.mxu0 %v3819_v14 }
 0x4b7   : > { %2337 = vmatprep.subr.bf16.mxu0 %v3824_v15 }
 0x4ba   : > { %2338 = vmatpush2.bf16.msra.mxu0 %v3822_v17 }
 0x4bb   : > { %3454 = vmatprep.subr.bf16.mxu0 %v4166_v3 }
 0x53d   : > { %v1605_v18 = vpop.f32.mrf.mxu0  ;;  %v4523_v19 = vpop.f32.mrf.mxu1 }
 0x53e   : > { %v1756_v21 = vadd.f32 %v4502_v24, %v1605_v18  ;;  %v1758_v22 = vadd.f32 %v4506_v28, %v1605_v18  ;;  %v1760_v23 = vadd.f32 %v4510_v30, %v1605_v18  ;;  %v1762_v36 = vadd.f32 %v4514_v32, %v1605_v18 }
 0x53f   : > { %v4530_v37 = vadd.f32 %v4518_v34, %v1605_v18  ;;  %v4532_v40 = vpop.f32.mrf.mxu0  ;;  %v3452_v41 = vpop.f32.mrf.mxu1 }
 0x540   : > { %v1770_v42 = vrot.slane %v1756_v21, 4  ;;  %v1782_v43 = vrot.slane %v1758_v22, 4  ;;  %v1794_v44 = vrot.slane %v1760_v23, 4  ;;  %v1806_v45 = vrot.slane %v1762_v36, 4 }
 0x541   : > { %v1818_v46 = vrot.slane %v4530_v37, 4  ;;  %v4537_v24 = vadd.f32 %v4504_v25, %v4532_v40  ;;  %v4541_v28 = vadd.f32 %v4508_v29, %v4532_v40  ;;  %v4545_v30 = vadd.f32 %v4512_v31, %v4532_v40  ;;  %v1609_v32 = vpop.f32.mrf.mxu0  ;;  %v2828_v34 = vpop.f32.mrf.mxu1 }
 0x542   : > { %v1771_v47 = vadd.f32 %v1770_v42, %v1756_v21  ;;  %v1783_v48 = vadd.f32 %v1782_v43, %v1758_v22  ;;  %v1795_v49 = vadd.f32 %v1794_v44, %v1760_v23  ;;  %v1807_v50 = vadd.f32 %v1806_v45, %v1762_v36 }
 0x543   : > { %v1819_v51 = vadd.f32 %v1818_v46, %v4530_v37  ;;  %v1776_v52 = vrot.slane %v4537_v24, 4  ;;  %v1610_v25 = vpop.f32.mrf.mxu0  ;;  %v3453_v53 = vpop.f32.mrf.mxu1  ;;  %v1788_v56 = vrot.slane %v4541_v28, 4  ;;  %v1800_v57 = vrot.slane %v4545_v30, 4 }
 0x544   : > { %v1772_v54 = vrot.slane %v1771_v47, 2  ;;  %v1784_v38 = vrot.slane %v1783_v48, 2  ;;  %v1796_v29 = vrot.slane %v1795_v49, 2  ;;  %v1808_v39 = vrot.slane %v1807_v50, 2 }
 0x545   : > { %v1820_v55 = vrot.slane %v1819_v51, 2  ;;  %v1777_v31 = vadd.f32 %v1776_v52, %v4537_v24  ;;  %v4554_v63 = vadd.f32 %v4516_v33, %v4532_v40  ;;  %v1789_v6 = vadd.f32 %v1788_v56, %v4541_v28 }
 0x546   : > { %v1773_v58 = vadd.f32 %v1772_v54, %v1771_v47  ;;  %v1785_v59 = vadd.f32 %v1784_v38, %v1783_v48  ;;  %v1797_v60 = vadd.f32 %v1796_v29, %v1795_v49  ;;  %v1809_v61 = vadd.f32 %v1808_v39, %v1807_v50 }
 0x547   : > { %v1821_v62 = vadd.f32 %v1820_v55, %v1819_v51  ;;  %v1778_v5 = vrot.slane %v1777_v31, 2  ;;  %v1801_v41 = vadd.f32 %v1800_v57, %v4545_v30  ;;  %v1790_v46 = vrot.slane %v1789_v6, 2 }
 0x548   : > { %v1774_v10 = vrot.slane %v1773_v58, 1  ;;  %v1786_v14 = vrot.slane %v1785_v59, 1  ;;  %v1798_v15 = vrot.slane %v1797_v60, 1  ;;  %v1810_v17 = vrot.slane %v1809_v61, 1 }
 0x549   : > { %v1822_v18 = vrot.slane %v1821_v62, 1  ;;  %v1812_v32 = vrot.slane %v4554_v63, 4  ;;  %v1779_v34 = vadd.f32 %v1778_v5, %v1777_v31  ;;  %v1802_v51 = vrot.slane %v1801_v41, 2 }
 0x54a   : > { %v1775_v42 = vadd.f32 %v1774_v10, %v1773_v58  ;;  %v1787_v43 = vadd.f32 %v1786_v14, %v1785_v59  ;;  %v1799_v44 = vadd.f32 %v1798_v15, %v1797_v60  ;;  %v1811_v45 = vadd.f32 %v1810_v17, %v1809_v61 }
 0x54b   : > { %v1823_v50 = vadd.f32 %v1822_v18, %v1821_v62  ;;  %v1780_v52 = vrot.slane %v1779_v34, 1  ;;  %v1813_v29 = vadd.f32 %v1812_v32, %v4554_v63  ;;  %v1791_v55 = vadd.f32 %v1790_v46, %v1789_v6 }
 0x54c   : > { %v1830_v33 = vmul.f32 0.125, %v1775_v42  ;;  %v1832_v47 = vmul.f32 0.125, %v1787_v43  ;;  %v1834_v48 = vmul.f32 0.125, %v1799_v44  ;;  %v1836_v49 = vmul.f32 0.125, %v1811_v45 }
 0x54d   : > { %v1781_v39 = vadd.f32 %v1780_v52, %v1779_v34  ;;  %v1838_v58 = vmul.f32 0.125, %v1823_v50  ;;  %v4578_v61 = vadd.f32 %v4520_v35, %v4532_v40  ;;  %v1814_v5 = vrot.slane %v1813_v29, 2 }
 0x54e   : > { %v4559_v25 = vsub.f32 %v1756_v21, %v1830_v33  ;;  %v4561_v53 = vsub.f32 %v1758_v22, %v1832_v47  ;;  %v4563_v54 = vsub.f32 %v1760_v23, %v1834_v48  ;;  %v4565_v38 = vsub.f32 %v1762_v36, %v1836_v49 }
 0x54f   : > { %v1792_v23 = vrot.slane %v1791_v55, 1  ;;  %v1831_v57 = vmul.f32 0.125, %v1781_v39  ;;  %v1803_v36 = vadd.f32 %v1802_v51, %v1801_v41  ;;  %v4586_v43 = vsub.f32 %v4530_v37, %v1838_v58 }
 0x550   : > { %v1850_v31 = vmul.f32 %v4559_v25, %v4559_v25  ;;  %v1852_v56 = vmul.f32 %v4561_v53, %v4561_v53  ;;  %v1854_v21 = vmul.f32 %v4563_v54, %v4563_v54  ;;  %v1856_v22 = vmul.f32 %v4565_v38, %v4565_v38 }
 0x551   : > { %v1793_v6 = vadd.f32 %v1792_v23, %v1791_v55  ;;  %v4581_v10 = vsub.f32 %v4537_v24, %v1831_v57  ;;  %v1804_v42 = vrot.slane %v1803_v36, 1  ;;  %v1824_v40 = vrot.slane %v4578_v61, 4 }
 0x552   : > { %v1860_v59 = vrot.slane %v1850_v31, 4  ;;  %v1872_v60 = vrot.slane %v1852_v56, 4  ;;  %v1884_v62 = vrot.slane %v1854_v21, 4  ;;  %v1896_v17 = vrot.slane %v1856_v22, 4 }
 0x553   : > { %v1833_v18 = vmul.f32 0.125, %v1793_v6  ;;  %v1851_v41 = vmul.f32 %v4581_v10, %v4581_v10  ;;  %v1815_v32 = vadd.f32 %v1814_v5, %v1813_v29  ;;  %v1805_v50 = vadd.f32 %v1804_v42, %v1803_v36 }
 0x554   : > { %v1861_v14 = vadd.f32 %v1860_v59, %v1850_v31  ;;  %v1873_v15 = vadd.f32 %v1872_v60, %v1852_v56  ;;  %v1885_v45 = vadd.f32 %v1884_v62, %v1854_v21  ;;  %v1897_v47 = vadd.f32 %v1896_v17, %v1856_v22 }
 0x555   : > { %v4590_v46 = vsub.f32 %v4541_v28, %v1833_v18  ;;  %v1866_v24 = vrot.slane %v1851_v41, 4  ;;  %v1816_v37 = vrot.slane %v1815_v32, 1  ;;  %v1858_v51 = vmul.f32 %v4586_v43, %v4586_v43 }
 0x556   : > { %v1862_v44 = vrot.slane %v1861_v14, 2  ;;  %v1874_v35 = vrot.slane %v1873_v15, 2  ;;  %v1825_v55 = vadd.f32 %v1824_v40, %v4578_v61  ;;  %v1886_v28 = vrot.slane %v1885_v45, 2 }
 0x557   : > { %v1853_v48 = vmul.f32 %v4590_v46, %v4590_v46  ;;  %v1867_v49 = vadd.f32 %v1866_v24, %v1851_v41  ;;  %v1817_v29 = vadd.f32 %v1816_v37, %v1815_v32  ;;  %v1898_v23 = vrot.slane %v1897_v47, 2 }
 0x558   : > { %v1863_v34 = vadd.f32 %v1862_v44, %v1861_v14  ;;  %v1875_v33 = vadd.f32 %v1874_v35, %v1873_v15  ;;  %v1835_v59 = vmul.f32 0.125, %v1805_v50  ;;  %v1908_v60 = vrot.slane %v1858_v51, 4 }
 0x559   : > { %v1868_v31 = vrot.slane %v1867_v49, 2  ;;  %v1878_v56 = vrot.slane %v1853_v48, 4  ;;  %v1826_v62 = vrot.slane %v1825_v55, 2  ;;  %v1887_v5 = vadd.f32 %v1886_v28, %v1885_v45 }
 0x55a   : > { %v1864_v52 = vrot.slane %v1863_v34, 1  ;;  %v1876_v39 = vrot.slane %v1875_v33, 1  ;;  %v1837_v15 = vmul.f32 0.125, %v1817_v29  ;;  %v4598_v17 = vsub.f32 %v4545_v30, %v1835_v59 }
 0x55b   : > { %v1869_v57 = vadd.f32 %v1868_v31, %v1867_v49  ;;  %v1879_v58 = vadd.f32 %v1878_v56, %v1853_v48  ;;  %v1899_v18 = vadd.f32 %v1898_v23, %v1897_v47  ;;  %v1827_v32 = vadd.f32 %v1826_v62, %v1825_v55 }
 0x55c   : > { %v1865_v21 = vadd.f32 %v1864_v52, %v1863_v34  ;;  %v1877_v22 = vadd.f32 %v1876_v39, %v1875_v33  ;;  %v4601_v40 = vsub.f32 %v4554_v63, %v1837_v15  ;;  %v1855_v24 = vmul.f32 %v4598_v17, %v4598_v17 }
 0x55d   : > { %v1870_v6 = vrot.slane %v1869_v57, 1  ;;  %v1880_v14 = vrot.slane %v1879_v58, 2  ;;  %v1888_v34 = vrot.slane %v1887_v5, 1  ;;  %v1909_v45 = vadd.f32 %v1908_v60, %v1858_v51 }
 0x55e   : > { %v1920_v36 = vmul.f32 0.125, %v1865_v21  ;;  %v1922_v41 = vmul.f32 0.125, %v1877_v22  ;;  %v1857_v30 = vmul.f32 %v4601_v40, %v4601_v40  ;;  %v1890_v49 = vrot.slane %v1855_v24, 4 }
 0x55f   : > { %v1871_v42 = vadd.f32 %v1870_v6, %v1869_v57  ;;  %v1881_v44 = vadd.f32 %v1880_v14, %v1879_v58  ;;  %v1828_v47 = vrot.slane %v1827_v32, 1  ;;  %v1900_v50 = vrot.slane %v1899_v18, 1 }
 0x560   : > { %v1930_v35 = vadd.f32 1e-05, %v1920_v36  ;;  %v1932_v37 = vadd.f32 1e-05, %v1922_v41  ;;  %v1891_v63 = vadd.f32 %v1890_v49, %v1855_v24  ;;  %v1902_v28 = vrot.slane %v1857_v30, 4 }
 0x561   : > { %v1882_v33 = vrot.slane %v1881_v44, 1  ;;  %v1921_v48 = vmul.f32 0.125, %v1871_v42  ;;  %v1829_v31 = vadd.f32 %v1828_v47, %v1827_v32  ;;  %v1889_v56 = vadd.f32 %v1888_v34, %v1887_v5 }
 0x562   : > { %3845 = vrsqrt.f32 %v1930_v35  ;;  %v1910_v29 = vrot.slane %v1909_v45, 2  ;;  %v1892_v51 = vrot.slane %v1891_v63, 2  ;;  %v1903_v21 = vadd.f32 %v1902_v28, %v1857_v30 }
 0x563   : > { %v1883_v52 = vadd.f32 %v1882_v33, %v1881_v44  ;;  %v1931_v39 = vadd.f32 1e-05, %v1921_v48  ;;  %v1839_v23 = vmul.f32 0.125, %v1829_v31  ;;  %v1901_v22 = vadd.f32 %v1900_v50, %v1899_v18 }
 0x564   : > { %v1893_v58 = vadd.f32 %v1892_v51, %v1891_v63  ;;  %v1904_v59 = vrot.slane %v1903_v21, 2  ;;  %v1911_v36 = vadd.f32 %v1910_v29, %v1909_v45  ;;  %v1924_v62 = vmul.f32 0.125, %v1889_v56  ;;  %v4613_v29 = vld [vmem:[#allocation13 + $0x6] ss:$8 sm:$0x3] }
 0x565   : > { %v1923_v55 = vmul.f32 0.125, %v1883_v52  ;;  %3847 = vrsqrt.f32 %v1931_v39  ;;  %v4608_v60 = vsub.f32 %v4578_v61, %v1839_v23  ;;  %v1926_v15 = vmul.f32 0.125, %v1901_v22  ;;  %v1769_v51 = vld [vmem:[#allocation13 + $0x7] ss:$8 sm:$0x3] }
 0x566   : > { %3849 = vrsqrt.f32 %v1932_v37  ;;  %v1894_v6 = vrot.slane %v1893_v58, 1  ;;  %v1905_v14 = vadd.f32 %v1904_v59, %v1903_v21  ;;  %v1912_v18 = vrot.slane %v1911_v36, 1 }
 0x567   : > { %v1933_v57 = vadd.f32 1e-05, %v1923_v55  ;;  %v1859_v5 = vmul.f32 %v4608_v60, %v4608_v60  ;;  %v1934_v35 = vadd.f32 1e-05, %v1924_v62  ;;  %v1936_v33 = vadd.f32 1e-05, %v1926_v15 }
 0x568   : > { %v1895_v41 = vadd.f32 %v1894_v6, %v1893_v58  ;;  %v1906_v42 = vrot.slane %v1905_v14, 1  ;;  %v1913_v49 = vadd.f32 %v1912_v18, %v1911_v36  ;;  %v4619_v36 = vrot.slane %v1769_v51, %v4420_v26 }
 0x569   : > { %3851 = vrsqrt.f32 %v1933_v57  ;;  %v1914_v44 = vrot.slane %v1859_v5, 4 }
 0x56a   : > { %v1907_v24 = vadd.f32 %v1906_v42, %v1905_v14  ;;  %v1925_v32 = vmul.f32 0.125, %v1895_v41  ;;  %3853 = vrsqrt.f32 %v1934_v35  ;;  %v1928_v28 = vmul.f32 0.125, %v1913_v49 }
 0x56b   : > { %v1915_v34 = vadd.f32 %v1914_v44, %v1859_v5  ;;  %v4624_v5 = vrot.slane %v1769_v51, %v4422_v27 }
 0x56c   : > { %v1927_v61 = vmul.f32 0.125, %v1907_v24  ;;  %v1935_v48 = vadd.f32 1e-05, %v1925_v32  ;;  %v1938_v57 = vadd.f32 1e-05, %v1928_v28 }
 0x56d   : > { %v1916_v45 = vrot.slane %v1915_v34, 2 }
 0x56e   : > { %v1937_v50 = vadd.f32 1e-05, %v1927_v61  ;;  %3855 = vrsqrt.f32 %v1935_v48 }
 0x56f   : > { %v3846_v30 = vpop.eup %3845  ;;  %v1917_v37 = vadd.f32 %v1916_v45, %v1915_v34  ;;  %3857 = vrsqrt.f32 %v1936_v33 }
 0x570   : > { %3859 = vrsqrt.f32 %v1937_v50 }
 0x571   : > { %v1918_v39 = vrot.slane %v1917_v37, 1 }
 0x572   : > { %v3848_v47 = vpop.eup %3847 }
 0x573   : > { %v1960_v52 = vcombine.low %v3846_v30, %v3848_v47  ;;  %v3850_v63 = vpop.eup %3849  ;;  %v1919_v55 = vadd.f32 %v1918_v39, %v1917_v37 }
 0x575   : > { %v1967_v31 = vrot.slane %v1960_v52, %v4416_v20  ;;  %v1929_v22 = vmul.f32 0.125, %v1919_v55 }
 0x576   : > { %v3852_v56 = vpop.eup %3851 }
 0x577   : > { %v1974_v21 = vrot.slane %v1967_v31, %v4416_v20  ;;  %v1975_v23 = vcombine.low %v3850_v63, %v3852_v56  ;;  %v1939_v62 = vadd.f32 1e-05, %v1929_v22  ;;  %v3854_v18 = vpop.eup %3853 }
 0x579   : > { %v1982_v58 = vrot.slane %v1975_v23, %v4416_v20  ;;  %v2040_v59 = vmul.f32 %v1974_v21, %v4613_v29  ;;  %3861 = vrsqrt.f32 %v1939_v62 }
 0x57a   : > { %3863 = vrsqrt.f32 %v1938_v57 }
 0x57b   : > { %v1989_v6 = vrot.slane %v1982_v58, %v4416_v20  ;;  %v2057_v14 = vrot.slane %v2040_v59, %v4422_v27  ;;  %v2053_v15 = vrot.slane %v2040_v59, %v4420_v26  ;;  %v3856_v35 = vpop.eup %3855 }
 0x57c   : > { %v3858_v61 = vpop.eup %3857  ;;  %v1990_v48 = vcombine.low %v3854_v18, %v3856_v35 }
 0x57d   : > { %v2041_v41 = vmul.f32 %v1989_v6, %v4613_v29  ;;  %v2101_v42 = vmul.f32 %v2057_v14, %v4581_v10  ;;  %v2100_v44 = vmul.f32 %v2053_v15, %v4559_v25  ;;  %v3860_v45 = vpop.eup %3859 }
 0x57e   : > { %v1997_v10 = vrot.slane %v1990_v48, %v4416_v20  ;;  %v2005_v25 = vcombine.low %v3858_v61, %v3860_v45 }
 0x57f   : > { %v2065_v24 = vrot.slane %v2041_v41, %v4422_v27  ;;  %v2122_v32 = vadd.f32 %v4624_v5, %v2101_v42  ;;  %v2061_v34 = vrot.slane %v2041_v41, %v4420_v26  ;;  %v2121_v33 = vadd.f32 %v4619_v36, %v2100_v44 }
 0x580   : > { %v2004_v39 = vrot.slane %v1997_v10, %v4416_v20  ;;  %v2012_v63 = vrot.slane %v2005_v25, %v4416_v20 }
 0x581   : > { %v2103_v30 = vmul.f32 %v2065_v24, %v4590_v46  ;;  %v2102_v49 = vmul.f32 %v2061_v34, %v4561_v53  ;;  %v2132_v50 = vmax.f32 %v2122_v32, 0.0  ;;  %v2131_v52 = vmax.f32 %v2121_v33, 0.0 }
 0x582   : > { %v2019_v56 = vrot.slane %v2012_v63, %v4416_v20  ;;  %v2042_v46 = vmul.f32 %v2004_v39, %v4613_v29 }
 0x583   : > { %v2124_v47 = vadd.f32 %v4624_v5, %v2103_v30  ;;  %v2123_v37 = vadd.f32 %v4619_v36, %v2102_v49 }
 0x584   : > { %v2043_v51 = vmul.f32 %v2019_v56, %v4613_v29  ;;  %v2073_v21 = vrot.slane %v2042_v46, %v4422_v27  ;;  %v2069_v23 = vrot.slane %v2042_v46, %v4420_v26 }
 0x585   : > { %v2134_v28 = vmax.f32 %v2124_v47, 0.0  ;;  %v2133_v31 = vmax.f32 %v2123_v37, 0.0 }
 0x586   : > { %v3862_v22 = vpop.eup %3861  ;;  %v2081_v58 = vrot.slane %v2043_v51, %v4422_v27  ;;  %v2105_v59 = vmul.f32 %v2073_v21, %v4598_v17  ;;  %v2077_v62 = vrot.slane %v2043_v51, %v4420_v26  ;;  %v2104_v6 = vmul.f32 %v2069_v23, %v4563_v54 }
 0x587   : > { %v2142_v53 = vpack.c.bf16 %v2134_v28, %v2132_v50  ;;  %v2141_v55 = vpack.c.bf16 %v2133_v31, %v2131_v52  ;;  %v3864_v57 = vpop.eup %3863  ;;  %v3825_v52 = vld [vmem:[#allocation11 + $0x78] sm:$0xff]  }
 0x588   : > { %v2020_v14 = vcombine.low %v3864_v57, %v3862_v22  ;;  %v2107_v15 = vmul.f32 %v2081_v58, %v4601_v40  ;;  %v2126_v41 = vadd.f32 %v4624_v5, %v2105_v59  ;;  %v2106_v42 = vmul.f32 %v2077_v62, %v4565_v38  ;;  %3389 = vmatprep.subr.bf16.mxu1 %v3825_v52 }
 0x589   : > { %2339 = vmatprep.mubr.bf16.mxu0 %v2142_v53  ;;  %v2125_v44 = vadd.f32 %v4619_v36, %v2104_v6  ;;  %3390 = vmatpush3.bf16.msra.mxu1 %v4456_v2  ;;  %v3829_v2 = vld [vmem:[#allocation11 + $0x58] sm:$0xff]  }
 0x58a   : > { %2340 = vmatmul.mubr.bf16.vlgmr.msra.gmra.mxu0 %v2141_v55  ;;  %v2027_v18 = vrot.slane %v2020_v14, %v4416_v20  ;;  %v2128_v35 = vadd.f32 %v4624_v5, %v2107_v15  ;;  %v2136_v24 = vmax.f32 %v2126_v41, 0.0  ;;  %v2127_v17 = vadd.f32 %v4619_v36, %v2106_v42 }
 0x58b   : > { %v2135_v32 = vmax.f32 %v2125_v44, 0.0  ;;  %3455 = vmatpush3.bf16.msra.mxu0 %v3825_v52 }
 0x58c   : > { %v2034_v34 = vrot.slane %v2027_v18, %v4416_v20  ;;  %v2138_v54 = vmax.f32 %v2128_v35, 0.0  ;;  %v2137_v33 = vmax.f32 %v2127_v17, 0.0  ;;  %3456 = vmatprep.subr.bf16.mxu0 %v4166_v3 }
 0x58e   : > { %v2044_v40 = vmul.f32 %v2034_v34, %v4613_v29  ;;  %v2144_v61 = vpack.c.bf16 %v2138_v54, %v2136_v24  ;;  %v2143_v48 = vpack.c.bf16 %v2137_v33, %v2135_v32 }
 0x590   : > { %v2089_v38 = vrot.slane %v2044_v40, %v4422_v27  ;;  %v2085_v45 = vrot.slane %v2044_v40, %v4420_v26  ;;  %2349 = vmatprep.mubr.bf16.mxu0 %v2144_v61 }
 0x592   : > { %2350 = vmatmul.mubr.bf16.gmra.mxu0 %v2143_v48  ;;  %v2109_v30 = vmul.f32 %v2089_v38, %v4608_v60  ;;  %v2108_v49 = vmul.f32 %v2085_v45, %v4586_v43  ;;  %v3826_v43 = vld [vmem:[#allocation11 + $0x70] sm:$0xff]   ;;  %v3827_v60 = vld [vmem:[#allocation11 + $0x68] sm:$0xff]  }
 0x593   : > { %3457 = vmatpush3.bf16.msra.mxu0 %v3826_v43  ;;  %3391 = vmatprep.subr.bf16.mxu1 %v3826_v43 }
 0x594   : > { %v2130_v10 = vadd.f32 %v4624_v5, %v2109_v30  ;;  %v2129_v25 = vadd.f32 %v4619_v36, %v2108_v49  ;;  %3392 = vmatpush3.bf16.msra.mxu1 %v4461_v4  ;;  %3458 = vmatprep.subr.bf16.mxu0 %v4166_v3  ;;  %v3828_v36 = vld [vmem:[#allocation11 + $0x60] sm:$0xff]   ;;  %v3830_v4 = vld [vmem:[#allocation11 + $0x50] sm:$0xff]  }
 0x595   : > { %3393 = vmatprep.subr.bf16.mxu1 %v3827_v60 }
 0x596   : > { %v2140_v47 = vmax.f32 %v2130_v10, 0.0  ;;  %v2139_v50 = vmax.f32 %v2129_v25, 0.0 }
 0x597   : > { %3459 = vmatpush3.bf16.msra.mxu0 %v3827_v60 }
 0x598   : > { %v2146_v37 = vpack.c.bf16 %v2140_v47, %v2140_v47  ;;  %v2145_v29 = vpack.c.bf16 %v2139_v50, %v2139_v50  ;;  %3394 = vmatpush3.bf16.msra.mxu1 %v4470_v8  ;;  %3460 = vmatprep.subr.bf16.mxu0 %v4166_v3  ;;  %v3831_v8 = vld [vmem:[#allocation11 + $0x48] sm:$0xff]  }
 0x599   : > { %3395 = vmatprep.subr.bf16.mxu1 %v3828_v36 }
 0x59a   : > { %2359 = vmatprep.mubr.bf16.mxu0 %v2146_v37 }
 0x59b   : > { %2360 = vmatmul.mubr.bf16.gmra.mxu0 %v2145_v29 }
 0x59c   : > { %3470 = vmatprep.mubr.msk.bf16.mxu0 %vm4167_vm1, %v4166_v3  ;;  %3461 = vmatpush3.bf16.msra.mxu0 %v3828_v36 }
 0x59d   : > { %3396 = vmatpush3.bf16.msra.mxu1 %v4475_v9  ;;  %3462 = vmatprep.subr.bf16.mxu0 %v4166_v3  ;;  %v3832_v9 = vld [vmem:[#allocation11 + $0x40] sm:$0xff]  }
 0x59e   : > { %3397 = vmatprep.subr.bf16.mxu1 %v3829_v2 }
 0x5a0   : > { %3463 = vmatpush3.bf16.msra.mxu0 %v3829_v2 }
 0x5a1   : > { %3398 = vmatpush3.bf16.msra.mxu1 %v4483_v12  ;;  %3464 = vmatprep.subr.bf16.mxu0 %v4166_v3 }
 0x5a2   : > { %3399 = vmatprep.subr.bf16.mxu1 %v3830_v4 }
 0x5a4   : > { %3465 = vmatpush3.bf16.msra.mxu0 %v3830_v4 }
 0x5a5   : > { %3400 = vmatpush3.bf16.msra.mxu1 %v4488_v13  ;;  %3466 = vmatprep.subr.bf16.mxu0 %v4166_v3 }
 0x5a6   : > { %3401 = vmatprep.subr.bf16.mxu1 %v3831_v8 }
 0x5a8   : > { %3467 = vmatpush3.bf16.msra.mxu0 %v3831_v8 }
 0x5a9   : > { %3402 = vmatpush3.bf16.msra.mxu1 %v4493_v0  ;;  %3468 = vmatprep.subr.bf16.mxu0 %v4166_v3 }
 0x5aa   : > { %3403 = vmatprep.subr.bf16.mxu1 %v3832_v9 }
 0x5ac   : > { %3469 = vmatpush3.bf16.msra.mxu0 %v3832_v9 }
 0x5ad   : > { %3404 = vmatpush3.bf16.msra.mxu1 %v4497_v16 }
 0x5af   : > { %3471 = vmatmul.mubr.bf16.vlgmr.msra.gmra.mxu0 %v4454_v1 }
 0x5b0   : > { %3474 = vmatprep.mubr.msk.bf16.mxu0 %vm4167_vm1, %v4166_v3 }
 0x5b7   : > { %3475 = vmatmul.mubr.bf16.gmra.mxu0 %v4467_v7 }
 0x5b8   : > { %3478 = vmatprep.mubr.msk.bf16.mxu0 %vm4167_vm1, %v4166_v3 }
 0x5bf   : > { %3479 = vmatmul.mubr.bf16.gmra.mxu0 %v4480_v11 }
 0x64a   : > { %v2341_v12 = vpop.f32.mrf.mxu0 }
 0x64b   : > { %v2372_v13 = vrot.slane %v2341_v12, 4 }
 0x64c   : > { %v2343_v0 = vpop.f32.mrf.mxu0 }
 0x64d   : > { %v2373_v5 = vadd.f32 %v2372_v13, %v2341_v12  ;;  %v2378_v39 = vrot.slane %v2343_v0, 4 }
 0x64e   : > { %v2345_v63 = vpop.f32.mrf.mxu0 }
 0x64f   : > { %v2374_v28 = vrot.slane %v2373_v5, 2  ;;  %v2379_v16 = vadd.f32 %v2378_v39, %v2343_v0  ;;  %v2384_v31 = vrot.slane %v2345_v63, 4 }
 0x650   : > { %v2347_v1 = vpop.f32.mrf.mxu0 }
 0x651   : > { %v2375_v56 = vadd.f32 %v2374_v28, %v2373_v5  ;;  %v2380_v46 = vrot.slane %v2379_v16, 2  ;;  %v2385_v53 = vadd.f32 %v2384_v31, %v2345_v63  ;;  %v2390_v55 = vrot.slane %v2347_v1, 4 }
 0x652   : > { %v2351_v58 = vpop.f32.mrf.mxu0 }
 0x653   : > { %v2376_v7 = vrot.slane %v2375_v56, 1  ;;  %v2381_v51 = vadd.f32 %v2380_v46, %v2379_v16  ;;  %v2386_v21 = vrot.slane %v2385_v53, 2  ;;  %v2391_v3 = vadd.f32 %v2390_v55, %v2347_v1 }
 0x654   : > { %v2396_v59 = vrot.slane %v2351_v58, 4  ;;  %v2353_v41 = vpop.f32.mrf.mxu0 }
 0x655   : > { %v2377_v23 = vadd.f32 %v2376_v7, %v2375_v56  ;;  %v2382_v11 = vrot.slane %v2381_v51, 1  ;;  %v2387_v22 = vadd.f32 %v2386_v21, %v2385_v53  ;;  %v2392_v57 = vrot.slane %v2391_v3, 2 }
 0x656   : > { %v2397_v42 = vadd.f32 %v2396_v59, %v2351_v58  ;;  %v2402_v44 = vrot.slane %v2353_v41, 4  ;;  %v4691_v32 = vpop.f32.mrf.mxu0 }
 0x657   : > { %v2432_v62 = vmul.f32 0.125, %v2377_v23  ;;  %v2383_v6 = vadd.f32 %v2382_v11, %v2381_v51  ;;  %v2388_v14 = vrot.slane %v2387_v22, 1  ;;  %v2393_v15 = vadd.f32 %v2392_v57, %v2391_v3 }
 0x658   : > { %v2398_v34 = vrot.slane %v2397_v42, 2  ;;  %v2403_v54 = vadd.f32 %v2402_v44, %v2353_v41  ;;  %v2408_v33 = vrot.slane %v4691_v32, 4  ;;  %v4698_v45 = vpop.f32.mrf.mxu0 }
 0x659   : > { %v4689_v18 = vsub.f32 %v2341_v12, %v2432_v62  ;;  %v2433_v35 = vmul.f32 0.125, %v2383_v6  ;;  %v2389_v24 = vadd.f32 %v2388_v14, %v2387_v22  ;;  %v2394_v17 = vrot.slane %v2393_v15, 1 }
 0x65a   : > { %v2399_v30 = vadd.f32 %v2398_v34, %v2397_v42  ;;  %v2404_v49 = vrot.slane %v2403_v54, 2  ;;  %v2409_v10 = vadd.f32 %v2408_v33, %v4691_v32  ;;  %v2414_v25 = vrot.slane %v4698_v45, 4 }
 0x65b   : > { %v2452_v40 = vmul.f32 %v4689_v18, %v4689_v18  ;;  %v4696_v61 = vsub.f32 %v2343_v0, %v2433_v35  ;;  %v2434_v48 = vmul.f32 0.125, %v2389_v24  ;;  %v2395_v38 = vadd.f32 %v2394_v17, %v2393_v15  ;;  %v4707_v2 = vpop.f32.mrf.mxu0 }
 0x65c   : > { %v2400_v52 = vrot.slane %v2399_v30, 1  ;;  %v2405_v43 = vadd.f32 %v2404_v49, %v2403_v54  ;;  %v2410_v60 = vrot.slane %v2409_v10, 2  ;;  %v2415_v36 = vadd.f32 %v2414_v25, %v4698_v45 }
 0x65d   : > { %v2462_v47 = vrot.slane %v2452_v40, 4  ;;  %v2453_v50 = vmul.f32 %v4696_v61, %v4696_v61  ;;  %v4704_v37 = vsub.f32 %v2345_v63, %v2434_v48  ;;  %v2435_v29 = vmul.f32 0.125, %v2395_v38  ;;  %v4713_v63 = vpop.f32.mrf.mxu0 }
 0x65e   : > { %v2401_v13 = vadd.f32 %v2400_v52, %v2399_v30  ;;  %v2406_v0 = vrot.slane %v2405_v43, 1  ;;  %v2411_v5 = vadd.f32 %v2410_v60, %v2409_v10  ;;  %v2416_v39 = vrot.slane %v2415_v36, 2 }
 0x65f   : > { %v2463_v4 = vadd.f32 %v2462_v47, %v2452_v40  ;;  %v2468_v8 = vrot.slane %v2453_v50, 4  ;;  %v2454_v9 = vmul.f32 %v4704_v37, %v4704_v37  ;;  %v4711_v12 = vsub.f32 %v2347_v1, %v2435_v29  ;;  %v2365_v51 = vpop.f32.mrf.mxu0 }
 0x660   : > { %v2436_v46 = vmul.f32 0.125, %v2401_v13  ;;  %v2407_v53 = vadd.f32 %v2406_v0, %v2405_v43  ;;  %v2412_v55 = vrot.slane %v2411_v5, 1  ;;  %v2417_v7 = vadd.f32 %v2416_v39, %v2415_v36 }
 0x661   : > { %v2464_v28 = vrot.slane %v2463_v4, 2  ;;  %v2469_v16 = vadd.f32 %v2468_v8, %v2453_v50  ;;  %v2474_v31 = vrot.slane %v2454_v9, 4  ;;  %v2455_v56 = vmul.f32 %v4711_v12, %v4711_v12  ;;  %v2366_v62 = vpop.f32.mrf.mxu0 }
 0x662   : > { %v4717_v11 = vsub.f32 %v2351_v58, %v2436_v46  ;;  %v2437_v22 = vmul.f32 0.125, %v2407_v53  ;;  %v2413_v57 = vadd.f32 %v2412_v55, %v2411_v5  ;;  %v2418_v59 = vrot.slane %v2417_v7, 1 }
 0x663   : > { %v2465_v21 = vadd.f32 %v2464_v28, %v2463_v4  ;;  %v2470_v1 = vrot.slane %v2469_v16, 2  ;;  %v2475_v3 = vadd.f32 %v2474_v31, %v2454_v9  ;;  %v2480_v23 = vrot.slane %v2455_v56, 4 }
 0x664   : > { %v2456_v44 = vmul.f32 %v4717_v11, %v4717_v11  ;;  %v4721_v35 = vsub.f32 %v2353_v41, %v2437_v22  ;;  %v2438_v24 = vmul.f32 0.125, %v2413_v57  ;;  %v2419_v17 = vadd.f32 %v2418_v59, %v2417_v7 }
 0x665   : > { %v2466_v6 = vrot.slane %v2465_v21, 1  ;;  %v2471_v14 = vadd.f32 %v2470_v1, %v2469_v16  ;;  %v2476_v15 = vrot.slane %v2475_v3, 2  ;;  %v2481_v42 = vadd.f32 %v2480_v23, %v2455_v56 }
 0x666   : > { %v2486_v40 = vrot.slane %v2456_v44, 4  ;;  %v2457_v48 = vmul.f32 %v4721_v35, %v4721_v35  ;;  %v4726_v38 = vsub.f32 %v4691_v32, %v2438_v24  ;;  %v2439_v30 = vmul.f32 0.125, %v2419_v17 }
 0x667   : > { %v2467_v34 = vadd.f32 %v2466_v6, %v2465_v21  ;;  %v2472_v54 = vrot.slane %v2471_v14, 1  ;;  %v2477_v33 = vadd.f32 %v2476_v15, %v2475_v3  ;;  %v2482_v58 = vrot.slane %v2481_v42, 2 }
 0x668   : > { %v2487_v41 = vadd.f32 %v2486_v40, %v2456_v44  ;;  %v2492_v50 = vrot.slane %v2457_v48, 4  ;;  %v2458_v29 = vmul.f32 %v4726_v38, %v4726_v38  ;;  %v4731_v52 = vsub.f32 %v4698_v45, %v2439_v30 }
 0x669   : > { %v2522_v49 = vmul.f32 0.125, %v2467_v34  ;;  %v2473_v10 = vadd.f32 %v2472_v54, %v2471_v14  ;;  %v2478_v25 = vrot.slane %v2477_v33, 1  ;;  %v2483_v47 = vadd.f32 %v2482_v58, %v2481_v42 }
 0x66a   : > { %v2488_v8 = vrot.slane %v2487_v41, 2  ;;  %v2493_v32 = vadd.f32 %v2492_v50, %v2457_v48  ;;  %v2498_v9 = vrot.slane %v2458_v29, 4  ;;  %v2459_v13 = vmul.f32 %v4731_v52, %v4731_v52 }
 0x66b   : > { %v2532_v43 = vadd.f32 1e-05, %v2522_v49  ;;  %v2523_v60 = vmul.f32 0.125, %v2473_v10  ;;  %v2479_v36 = vadd.f32 %v2478_v25, %v2477_v33  ;;  %v2484_v4 = vrot.slane %v2483_v47, 1 }
 0x66c   : > { %v2489_v28 = vadd.f32 %v2488_v8, %v2487_v41  ;;  %v2494_v16 = vrot.slane %v2493_v32, 2  ;;  %v2499_v31 = vadd.f32 %v2498_v9, %v2458_v29  ;;  %v2504_v56 = vrot.slane %v2459_v13, 4 }
 0x66d   : > { %3865 = vrsqrt.f32 %v2532_v43  ;;  %v2533_v0 = vadd.f32 1e-05, %v2523_v60  ;;  %v2524_v5 = vmul.f32 0.125, %v2479_v36  ;;  %v2485_v39 = vadd.f32 %v2484_v4, %v2483_v47 }
 0x66e   : > { %v2420_v53 = vrot.slane %v4707_v2, 4  ;;  %v2490_v55 = vrot.slane %v2489_v28, 1  ;;  %v2495_v7 = vadd.f32 %v2494_v16, %v2493_v32  ;;  %v2500_v51 = vrot.slane %v2499_v31, 2 }
 0x66f   : > { %3867 = vrsqrt.f32 %v2533_v0  ;;  %v2534_v45 = vadd.f32 1e-05, %v2524_v5  ;;  %v2525_v46 = vmul.f32 0.125, %v2485_v39  ;;  %v2505_v21 = vadd.f32 %v2504_v56, %v2459_v13 }
 0x670   : > { %v2421_v3 = vadd.f32 %v2420_v53, %v4707_v2  ;;  %v2426_v23 = vrot.slane %v4713_v63, 4  ;;  %v2491_v22 = vadd.f32 %v2490_v55, %v2489_v28  ;;  %v2496_v57 = vrot.slane %v2495_v7, 1 }
 0x671   : > { %3869 = vrsqrt.f32 %v2534_v45  ;;  %v2535_v1 = vadd.f32 1e-05, %v2525_v46  ;;  %v2501_v59 = vadd.f32 %v2500_v51, %v2499_v31  ;;  %v2506_v62 = vrot.slane %v2505_v21, 2  ;;  %v4748_v31 = vld [vmem:[#allocation13 + $0x10] ss:$8 sm:$0x3] }
 0x672   : > { %v2422_v6 = vrot.slane %v2421_v3, 2  ;;  %v2427_v14 = vadd.f32 %v2426_v23, %v4713_v63  ;;  %v2526_v15 = vmul.f32 0.125, %v2491_v22  ;;  %v2497_v42 = vadd.f32 %v2496_v57, %v2495_v7 }
 0x673   : > { %3871 = vrsqrt.f32 %v2535_v1  ;;  %v2502_v44 = vrot.slane %v2501_v59, 1  ;;  %v2507_v24 = vadd.f32 %v2506_v62, %v2505_v21  ;;  %v2371_v21 = vld [vmem:[#allocation13 + $0x11] ss:$8 sm:$0x3] }
 0x674   : > { %v2423_v17 = vadd.f32 %v2422_v6, %v2421_v3  ;;  %v2428_v34 = vrot.slane %v2427_v14, 2  ;;  %v2536_v54 = vadd.f32 1e-05, %v2526_v15  ;;  %v2527_v33 = vmul.f32 0.125, %v2497_v42 }
 0x675   : > { %v2503_v58 = vadd.f32 %v2502_v44, %v2501_v59  ;;  %v2508_v40 = vrot.slane %v2507_v24, 1  ;;  %v4759_v59 = vrot.slane %v2371_v21, %v4420_v26  ;;  %v4762_v62 = vrot.slane %v2371_v21, %v4422_v27 }
 0x676   : > { %v2424_v48 = vrot.slane %v2423_v17, 1  ;;  %v2429_v30 = vadd.f32 %v2428_v34, %v2427_v14  ;;  %v2537_v49 = vadd.f32 1e-05, %v2527_v33  ;;  %3873 = vrsqrt.f32 %v2536_v54 }
 0x677   : > { %v2528_v10 = vmul.f32 0.125, %v2503_v58  ;;  %v2509_v25 = vadd.f32 %v2508_v40, %v2507_v24 }
 0x678   : > { %v2425_v47 = vadd.f32 %v2424_v48, %v2423_v17  ;;  %v2430_v41 = vrot.slane %v2429_v30, 1  ;;  %3875 = vrsqrt.f32 %v2537_v49 }
 0x679   : > { %v2538_v29 = vadd.f32 1e-05, %v2528_v10  ;;  %v2529_v43 = vmul.f32 0.125, %v2509_v25 }
 0x67a   : > { %v3866_v50 = vpop.eup %3865  ;;  %v2440_v60 = vmul.f32 0.125, %v2425_v47  ;;  %v2431_v36 = vadd.f32 %v2430_v41, %v2429_v30 }
 0x67b   : > { %v2539_v8 = vadd.f32 1e-05, %v2529_v43  ;;  %3877 = vrsqrt.f32 %v2538_v29 }
 0x67c   : > { %v3868_v4 = vpop.eup %3867  ;;  %v4740_v9 = vsub.f32 %v4707_v2, %v2440_v60  ;;  %v2441_v13 = vmul.f32 0.125, %v2431_v36 }
 0x67d   : > { %v2562_v32 = vcombine.low %v3866_v50, %v3868_v4  ;;  %3879 = vrsqrt.f32 %v2539_v8 }
 0x67e   : > { %v3870_v0 = vpop.eup %3869  ;;  %v2460_v39 = vmul.f32 %v4740_v9, %v4740_v9  ;;  %v4746_v28 = vsub.f32 %v4713_v63, %v2441_v13 }
 0x67f   : > { %v2569_v5 = vrot.slane %v2562_v32, %v4416_v20 }
 0x680   : > { %v3872_v16 = vpop.eup %3871  ;;  %v2510_v46 = vrot.slane %v2460_v39, 4  ;;  %v2461_v2 = vmul.f32 %v4746_v28, %v4746_v28 }
 0x681   : > { %v2576_v56 = vrot.slane %v2569_v5, %v4416_v20  ;;  %v2577_v45 = vcombine.low %v3870_v0, %v3872_v16 }
 0x682   : > { %v2511_v7 = vadd.f32 %v2510_v46, %v2460_v39  ;;  %v2516_v51 = vrot.slane %v2461_v2, 4 }
 0x683   : > { %v2642_v53 = vmul.f32 %v2576_v56, %v4748_v31  ;;  %v2584_v55 = vrot.slane %v2577_v45, %v4416_v20  ;;  %v3874_v22 = vpop.eup %3873 }
 0x684   : > { %v2512_v23 = vrot.slane %v2511_v7, 2  ;;  %v2517_v57 = vadd.f32 %v2516_v51, %v2461_v2 }
 0x685   : > { %v2655_v63 = vrot.slane %v2642_v53, %v4420_v26  ;;  %v2659_v1 = vrot.slane %v2642_v53, %v4422_v27  ;;  %v2591_v3 = vrot.slane %v2584_v55, %v4416_v20  ;;  %v3876_v6 = vpop.eup %3875 }
 0x686   : > { %v2513_v42 = vadd.f32 %v2512_v23, %v2511_v7  ;;  %v2592_v24 = vcombine.low %v3874_v22, %v3876_v6  ;;  %v2518_v17 = vrot.slane %v2517_v57, 2 }
 0x687   : > { %v2703_v14 = vmul.f32 %v2659_v1, %v4696_v61  ;;  %v2643_v15 = vmul.f32 %v2591_v3, %v4748_v31  ;;  %v2702_v44 = vmul.f32 %v2655_v63, %v4689_v18 }
 0x688   : > { %v2514_v33 = vrot.slane %v2513_v42, 1  ;;  %v3878_v58 = vpop.eup %3877  ;;  %v2599_v40 = vrot.slane %v2592_v24, %v4416_v20  ;;  %v2519_v48 = vadd.f32 %v2518_v17, %v2517_v57 }
 0x689   : > { %v2663_v34 = vrot.slane %v2643_v15, %v4420_v26  ;;  %v2667_v54 = vrot.slane %v2643_v15, %v4422_v27  ;;  %v2724_v30 = vadd.f32 %v4762_v62, %v2703_v14  ;;  %v2723_v18 = vadd.f32 %v4759_v59, %v2702_v44 }
 0x68a   : > { %v3880_v49 = vpop.eup %3879  ;;  %v2515_v10 = vadd.f32 %v2514_v33, %v2513_v42  ;;  %v2606_v47 = vrot.slane %v2599_v40, %v4416_v20  ;;  %v2520_v50 = vrot.slane %v2519_v48, 1 }
 0x68b   : > { %v2705_v61 = vmul.f32 %v2667_v54, %v4711_v12  ;;  %v2704_v25 = vmul.f32 %v2663_v34, %v4704_v37  ;;  %v2607_v41 = vcombine.low %v3878_v58, %v3880_v49  ;;  %v2734_v12 = vmax.f32 %v2724_v30, 0.0 }
 0x68c   : > { %v2530_v29 = vmul.f32 0.125, %v2515_v10  ;;  %v2644_v36 = vmul.f32 %v2606_v47, %v4748_v31  ;;  %v2521_v8 = vadd.f32 %v2520_v50, %v2519_v48  ;;  %v2733_v37 = vmax.f32 %v2723_v18, 0.0 }
 0x68d   : > { %v2726_v43 = vadd.f32 %v4762_v62, %v2705_v61  ;;  %v2725_v60 = vadd.f32 %v4759_v59, %v2704_v25  ;;  %v2614_v4 = vrot.slane %v2607_v41, %v4416_v20 }
 0x68e   : > { %v2540_v32 = vadd.f32 1e-05, %v2530_v29  ;;  %v2675_v5 = vrot.slane %v2644_v36, %v4422_v27  ;;  %v2531_v16 = vmul.f32 0.125, %v2521_v8  ;;  %v2671_v56 = vrot.slane %v2644_v36, %v4420_v26  ;;  %v3352_v8 = vld [vmem:[%s4877_s7] ss:$0 sm:$0xff] }
 0x68f   : > { %v2736_v13 = vmax.f32 %v2726_v43, 0.0  ;;  %v2735_v0 = vmax.f32 %v2725_v60, 0.0  ;;  %v2621_v39 = vrot.slane %v2614_v4, %v4416_v20 }
 0x690   : > { %v2707_v2 = vmul.f32 %v2675_v5, %v4721_v35  ;;  %v2541_v55 = vadd.f32 1e-05, %v2531_v16  ;;  %v2706_v7 = vmul.f32 %v2671_v56, %v4717_v11  ;;  %3881 = vrsqrt.f32 %v2540_v32 }
 0x691   : > { %v2832_v45 = vpack.c.bf16 %v2736_v13, %v2734_v12  ;;  %v2831_v46 = vpack.c.bf16 %v2735_v0, %v2733_v37  ;;  %v2645_v53 = vmul.f32 %v2621_v39, %v4748_v31 }
 0x692   : > { %3883 = vrsqrt.f32 %v2541_v55  ;;  %v2728_v1 = vadd.f32 %v4762_v62, %v2707_v2  ;;  %v2727_v35 = vadd.f32 %v4759_v59, %v2706_v7 }
 0x693   : > { %2917 = vmatprep.mubr.bf16.mxu1 %v2832_v45  ;;  %v2683_v51 = vrot.slane %v2645_v53, %v4422_v27  ;;  %v2679_v21 = vrot.slane %v2645_v53, %v4420_v26 }
 0x694   : > { %2918 = vmatmul.mubr.bf16.vlgmr.msra.gmra.mxu1 %v2831_v46  ;;  %v2738_v22 = vmax.f32 %v2728_v1, 0.0  ;;  %v2737_v6 = vmax.f32 %v2727_v35, 0.0 }
 0x695   : > { %v2709_v63 = vmul.f32 %v2683_v51, %v4731_v52  ;;  %v2708_v3 = vmul.f32 %v2679_v21, %v4726_v38 }
 0x697   : > { %v2730_v23 = vadd.f32 %v4762_v62, %v2709_v63  ;;  %v2729_v11 = vadd.f32 %v4759_v59, %v2708_v3 }
 0x699   : > { %v2740_v57 = vmax.f32 %v2730_v23, 0.0  ;;  %v2739_v14 = vmax.f32 %v2729_v11, 0.0 }
 0x69b   : > { %v2834_v15 = vpack.c.bf16 %v2740_v57, %v2738_v22  ;;  %v2833_v42 = vpack.c.bf16 %v2739_v14, %v2737_v6 }
 0x69d   : > { %2925 = vmatprep.mubr.bf16.mxu1 %v2834_v15  ;;  %v3882_v44 = vpop.eup %3881 }
 0x69e   : > { %2926 = vmatmul.mubr.bf16.gmra.mxu1 %v2833_v42 }
 0x69f   : > { %v3884_v52 = vpop.eup %3883 }
 0x6a0   : > { %v2622_v24 = vcombine.low %v3882_v44, %v3884_v52 }
 0x6a2   : > { %v2629_v17 = vrot.slane %v2622_v24, %v4416_v20 }
 0x6a4   : > { %v2636_v38 = vrot.slane %v2629_v17, %v4416_v20  ;;  %v2975_v20 = vpop.f32.mrf.mxu0 }
 0x6a6   : > { %v2646_v34 = vmul.f32 %v2636_v38, %v4748_v31  ;;  %v3472_v31 = vpop.f32.mrf.mxu0 }
 0x6a8   : > { %v2691_v54 = vrot.slane %v2646_v34, %v4422_v27  ;;  %v2687_v33 = vrot.slane %v2646_v34, %v4420_v26  ;;  %v2978_v18 = vpop.f32.mrf.mxu0 }
 0x6aa   : > { %v2711_v58 = vmul.f32 %v2691_v54, %v4746_v28  ;;  %v2710_v40 = vmul.f32 %v2687_v33, %v4740_v9  ;;  %v3473_v27 = vpop.f32.mrf.mxu0 }
 0x6ac   : > { %v2732_v48 = vadd.f32 %v4762_v62, %v2711_v58  ;;  %v2731_v30 = vadd.f32 %v4759_v59, %v2710_v40  ;;  %v2983_v47 = vpop.f32.mrf.mxu0 }
 0x6ae   : > { %v2742_v49 = vmax.f32 %v2732_v48, 0.0  ;;  %v2741_v61 = vmax.f32 %v2731_v30, 0.0  ;;  %v3476_v26 = vpop.f32.mrf.mxu0 }
 0x6b0   : > { %v2836_v10 = vpack.c.bf16 %v2742_v49, %v2742_v49  ;;  %v2835_v25 = vpack.c.bf16 %v2741_v61, %v2741_v61  ;;  %v2986_v41 = vpop.f32.mrf.mxu0 }
 0x6b2   : > { %2933 = vmatprep.mubr.bf16.mxu1 %v2836_v10  ;;  %v3477_v28 = vpop.f32.mrf.mxu0 }
 0x6b3   : > { %2934 = vmatmul.mubr.bf16.gmra.mxu1 %v2835_v25 }
 0x6b4   : > { %v2991_v9 = vpop.f32.mrf.mxu0 }
 0x6b6   : > { %v3480_v50 = vpop.f32.mrf.mxu0 }
 0x6b8   : > { %v2994_v62 = vpop.f32.mrf.mxu0 }
 0x6ba   : > { %v3481_v29 = vpop.f32.mrf.mxu0 }
 0x754   : > { %v3405_v59 = vpop.f32.mrf.mxu1 }
 0x756   : > { %v3406_v43 = vpop.f32.mrf.mxu1 }
 0x757   : > { %v3407_v60 = vadd.f32 %v3406_v43, %v3405_v59 }
 0x758   : > { %v3408_v36 = vpop.f32.mrf.mxu1 }
 0x759   : > { %v2997_v4 = vadd.f32 %v3407_v60, %v2975_v20 }
 0x75a   : > { %v3409_v12 = vpop.f32.mrf.mxu1 }
 0x75b   : > { %v3002_v32 = vadd.f32 %v2997_v4, %v4523_v19  ;;  %v3410_v13 = vadd.f32 %v3409_v12, %v3408_v36 }
 0x75d   : > { %v3014_v37 = vadd.f32 %v3352_v8, %v3002_v32  ;;  %v2998_v0 = vadd.f32 %v3410_v13, %v2978_v18 }
 0x75e   : > { %v3411_v39 = vpop.f32.mrf.mxu1 }
 0x75f   : > { %3019 = vst [vmem:[%s4807_s9] sm:$0xff] %v3014_v37  ;;  %v3003_v5 = vadd.f32 %v2998_v0, %v4523_v19 }
 0x760   : > { %v3412_v56 = vpop.f32.mrf.mxu1 }
 0x761   : > { %v3015_v16 = vadd.f32 %v3352_v8, %v3003_v5  ;;  %v3413_v45 = vadd.f32 %v3412_v56, %v3411_v39 }
 0x762   : > { %v3414_v46 = vpop.f32.mrf.mxu1 }
 0x763   : > { %3020 = vst [vmem:[%s4807_s9 + $0x8] sm:$0xff] %v3015_v16  ;;  %v2999_v2 = vadd.f32 %v3413_v45, %v2983_v47 }
 0x764   : > { %v3415_v53 = vpop.f32.mrf.mxu1 }
 0x765   : > { %v3004_v55 = vadd.f32 %v2999_v2, %v4523_v19  ;;  %v3416_v7 = vadd.f32 %v3415_v53, %v3414_v46 }
 0x767   : > { %v3016_v51 = vadd.f32 %v3352_v8, %v3004_v55  ;;  %v3000_v21 = vadd.f32 %v3416_v7, %v2986_v41 }
 0x769   : > { %3021 = vst [vmem:[%s4807_s9 + $0x10] sm:$0xff] %v3016_v51  ;;  %v3005_v63 = vadd.f32 %v3000_v21, %v4523_v19 }
 0x76b   : > { %v3017_v1 = vadd.f32 %v3352_v8, %v3005_v63 }
 0x76d   : > { %3022 = vst [vmem:[%s4807_s9 + $0x18] sm:$0xff] %v3017_v1 }
 0x773   : > { %v3417_v3 = vpop.f32.mrf.mxu1 }
 0x775   : > { %v3418_v35 = vpop.f32.mrf.mxu1 }
 0x776   : > { %v3419_v23 = vadd.f32 %v3418_v35, %v3417_v3 }
 0x777   : > { %v3420_v11 = vpop.f32.mrf.mxu1 }
 0x778   : > { %v3001_v22 = vadd.f32 %v3419_v23, %v2991_v9 }
 0x779   : > { %v3421_v57 = vpop.f32.mrf.mxu1 }
 0x77a   : > { %v3006_v6 = vadd.f32 %v3001_v22, %v4523_v19 }
 0x77c   : > { %v3018_v14 = vadd.f32 %v3352_v8, %v3006_v6 }
 0x77e   : > { %3023 = vst [vmem:[%s4807_s9 + $0x20] sm:$0xff] %v3018_v14 }
 0x77f   : > { %4082 = shalt.err (!%p4079_p13)
}
 0x780   : > { %s4083_s10 = scalar_lea.hbm %s4824_s0, 640  ;;  %s4087_s12 = scalar_lea.hbm %s4878_s8, 1280 }
 0x781   : > { %p4084_p1 = scmp.ne.s32.totalorder %s4824_s0, %s4083_s10  ;;  %p4088_p11 = scmp.lt.s32.totalorder %s4824_s0, %s4878_s8 }
 0x782   : > { %p4089_p12 = scmp.lt.s32.totalorder %s4087_s12, %s4083_s10 }
 0x783   : > { %p4085_p3 = pnand %p4084_p1, %p4909_p2 }
 0x784   : > { %p4090_p6 = por %p4089_p12, %p4088_p11 }
 0x785   : > { %p4086_p4 = pneg %p4085_p3 }
 0x787   : > { %p4091_p0 = pnand %p4090_p6, %p4086_p4 }
 0x789   : > { %4094 = shalt.err (!%p4091_p0)
}
 0x78a   : > { %s4169_s16 = smov 128   ;;  %s4170_s25 = smov 8  }
 0x78b   : > { %3510 = dma.vmem_to_hbm [thread:$0]  (%p4909_p2), %s4818_s24, 640, %s4824_s0, %s4829_s2, %s4169_s16, %s4169_s16, %s4170_s25  }
 0x78c PF: > { %s3053_s17 = sand.u32 1, %s4137_s27   ;;  %p4910_p5 = scmp.ne.s32.totalorder %s4895_s22, 0 }
 0x78d   : > { %p4911_p9 = scmp.ge.s32.totalorder %s4149_s30, 2  ;;  %s3054_s23 = scalar_lea.sflag [#allocation4], %s3053_s17 }
 0x78f   : > { %p3536_p7 = pnand %p4911_p9, %p4910_p5 }
 0x791   : > { %p3537_p8 = pneg %p3536_p7 }
 0x793   : > { %4132 = dma.done.wait (%p3537_p8), %s3054_s23, 640  }
 0x794   : > { %4134 = vsyncadd (%p3537_p8), %s3054_s23, 4294966656  ;;  %p24_p10 = scmp.ge.s32.totalorder %s4317_s26, 4   ;;  %s4912_s27 = smov %s4141_s28 }
 0x795   : > { %s4913_s28 = smov %s4145_s29  ;;  %s4914_s29 = smov %s4328_s14 }
 0x796   : > { %s4915_s30 = smov %s4317_s26  ;;  %26 = sbr.rel (!%p24_p10) target bundleno = 11 (0xb), region = 134 }
 0x79b   :  { %3059 = vsyncpa [#allocation3], 1 }
 0x79c   :  { %3061 = vsyncpa [#allocation3 + $0x1], 1 }
 0x79d   :  { %3062 = vsyncpa [#allocation6], 1 }
 0x79e   :  { %3064 = vsyncpa [#allocation6 + $0x1], 1 }
 0x79f   :  { %3065 = vsyncpa [#allocation9], 1 }
 0x7a0   :  { %3066 = vsyncpa [#allocation12], 1 }
 0x7a1   :  { %3067 = vsyncpa [#allocation4], 1 }
 0x7a2   :  { %3069 = vsyncpa [#allocation4 + $0x1], 1 }

</bundles_post_ra>
